<compile_context>
chip_gen: v7x
topology: tpu7x:2x2x1
jax: 0.10.0
libtpu: 0.0.40
codegen_flags: <defaults>
</compile_context>

<pallas_src>
import functools

import jax
import jax.numpy as jnp
from jax.experimental import pallas as pl
from jax.experimental.pallas import tpu as pltpu

EPS = 1e-5


# ----------------------------- shared helpers -------------------------------
def _layernorm(x, g, b):
    mu = jnp.mean(x, axis=-1, keepdims=True)
    var = jnp.mean((x - mu) ** 2, axis=-1, keepdims=True)
    return (x - mu) * jax.lax.rsqrt(var + EPS) * g + b


def _round_up(x, m):
    return (x + m - 1) // m * m


# ------------------------------- kernels -------------------------------------
def encoder_kernel(x_in_ref, pos_ref,
                   ln1_g_ref, ln1_b_ref, wqkv_ref, bqkv_ref, wo_ref, bo_ref,
                   ln2_g_ref, ln2_b_ref, wfc_ref, bfc_ref, wproj_ref, bproj_ref,
                   x_ref, attn_buf, *, num_heads):
    """One (batch_tile, layer) grid step of the CLIP text transformer.

    x_ref (the output block) doubles as the resident f32 activation buffer
    across the layer grid axis.  Weights arrive in bf16; matmuls accumulate
    in f32; LayerNorm and softmax statistics stay in f32.
    """
    layer = pl.program_id(1)

    @pl.when(layer == 0)
    def _():
        # fused positional-embedding add (replaces the standalone add kernel)
        x_ref[...] = x_in_ref[...] + pos_ref[...]

    xb = x_ref[...]                                  # (B, L, D) f32 residual
    B, L, D = xb.shape
    dh = D // num_heads
    scale = 1.0 / (dh ** 0.5)

    # causal mask built in-kernel (VPU work hidden under the MXU matmuls)
    rows = jax.lax.broadcasted_iota(jnp.int32, (L, L), 0)
    cols = jax.lax.broadcasted_iota(jnp.int32, (L, L), 1)
    causal = jnp.where(cols > rows, -1e9, 0.0).astype(jnp.float32)

    # --- pre-LN causal multi-head self-attention ---
    xn = _layernorm(xb, ln1_g_ref[0], ln1_b_ref[0])
    qkv = jnp.dot(xn.reshape(B * L, D).astype(jnp.bfloat16), wqkv_ref[0],
                  preferred_element_type=jnp.float32) + bqkv_ref[0]
    qkv = qkv.reshape(B, L, 3 * D)

    # static unroll over heads; head outputs go straight into a VMEM scratch
    # slice instead of a concatenate.
    for h in range(num_heads):
        qh = qkv[:, :, h * dh:(h + 1) * dh].astype(jnp.bfloat16)
        kh = qkv[:, :, D + h * dh:D + (h + 1) * dh].astype(jnp.bfloat16)
        vh = qkv[:, :, 2 * D + h * dh:2 * D + (h + 1) * dh].astype(jnp.bfloat16)
        s = jnp.einsum('bqd,bkd->bqk', qh, kh,
                       preferred_element_type=jnp.float32) * scale + causal
        s = s - jnp.max(s, axis=-1, keepdims=True)
        p = jnp.exp(s)
        p = p / jnp.sum(p, axis=-1, keepdims=True)
        attn_buf[:, :, h * dh:(h + 1) * dh] = jnp.einsum(
            'bqk,bkd->bqd', p.astype(jnp.bfloat16), vh,
            preferred_element_type=jnp.float32)

    attn = jnp.dot(attn_buf[...].reshape(B * L, D).astype(jnp.bfloat16),
                   wo_ref[0], preferred_element_type=jnp.float32) + bo_ref[0]
    x1 = xb + attn.reshape(B, L, D)

    # --- pre-LN MLP with QuickGELU (as in CLIP) ---
    x1n = _layernorm(x1, ln2_g_ref[0], ln2_b_ref[0])
    hid = jnp.dot(x1n.reshape(B * L, D).astype(jnp.bfloat16), wfc_ref[0],
                  preferred_element_type=jnp.float32) + bfc_ref[0]
    hid = hid * jax.nn.sigmoid(1.702 * hid)
    mlp = jnp.dot(hid.astype(jnp.bfloat16), wproj_ref[0],
                  preferred_element_type=jnp.float32) + bproj_ref[0]
    x_ref[...] = x1 + mlp.reshape(B, L, D)


def final_kernel(x_ref, g_ref, b_ref, proj_ref, o_ref):
    # ln_final on the gathered EOT tokens, then @ text_projection (bf16 MXU)
    xn = _layernorm(x_ref[...], g_ref[...], b_ref[...])
    o_ref[...] = jnp.dot(xn.astype(jnp.bfloat16), proj_ref[...],
                         preferred_element_type=jnp.float32)


# ------------------------------- wrappers -------------------------------------
def final_project(x_eot, ln_g, ln_b, proj):
    N, D = x_eot.shape
    E = proj.shape[1]
    return pl.pallas_call(
        final_kernel,
        out_shape=jax.ShapeDtypeStruct((N, E), jnp.float32),
        grid=(1,),
        in_specs=[pl.BlockSpec((N, D), lambda i: (0, 0)),
                  pl.BlockSpec((1, D), lambda i: (0, 0)),
                  pl.BlockSpec((1, D), lambda i: (0, 0)),
                  pl.BlockSpec((D, E), lambda i: (0, 0))],
        out_specs=pl.BlockSpec((N, E), lambda i: (0, 0)),
    )(x_eot, ln_g, ln_b, proj)


def text_encoder_forward(prompts, tokenized_prompts, params, num_heads,
                         b_tile=8):
    N, L, D = prompts.shape
    num_layers = params['wqkv'].shape[0]

    # Pad seq to a sublane multiple (at CLIP scale L=77, pad to 128 for
    # lane-dense scores); causal masking keeps the padding inert.
    L_pad = _round_up(L, 8)
    B_TILE = max(1, min(b_tile, N))
    N_pad = _round_up(N, B_TILE)

    x_in = prompts
    if (N_pad, L_pad) != (N, L):
        x_in = jnp.pad(prompts, ((0, N_pad - N), (0, L_pad - L), (0, 0)))
    pos = params['pos']
    if L_pad != L:
        pos = jnp.pad(pos, ((0, L_pad - L), (0, 0)))

    stacked_names = ['ln1_g', 'ln1_b', 'wqkv', 'bqkv', 'wo', 'bo',
                     'ln2_g', 'ln2_b', 'wfc', 'bfc', 'wproj', 'bproj']
    weights = [params[k] for k in stacked_names]

    def wspec(arr):  # one layer slice per grid step, streamed along axis l
        return pl.BlockSpec((1,) + arr.shape[1:], lambda b, l: (l, 0, 0))

    x = pl.pallas_call(
        functools.partial(encoder_kernel, num_heads=num_heads),
        out_shape=jax.ShapeDtypeStruct((N_pad, L_pad, D), jnp.float32),
        grid=(N_pad // B_TILE, num_layers),
        in_specs=[pl.BlockSpec((B_TILE, L_pad, D), lambda b, l: (b, 0, 0)),
                  pl.BlockSpec((L_pad, D), lambda b, l: (0, 0))]
                 + [wspec(w) for w in weights],
        out_specs=pl.BlockSpec((B_TILE, L_pad, D), lambda b, l: (b, 0, 0)),
        scratch_shapes=[pltpu.VMEM((B_TILE, L_pad, D), jnp.float32)],
        compiler_params=pltpu.CompilerParams(
            dimension_semantics=("parallel", "arbitrary"),
            vmem_limit_bytes=48 * 1024 * 1024),
    )(x_in, pos, *weights)

    x = x[:N, :L]
    # EOT-token gather (data-dependent; plain-JAX glue). LayerNorm is per
    # token, so gather-then-LN == LN-then-gather as in the PyTorch code.
    eot = jnp.argmax(tokenized_prompts, axis=-1)
    x_eot = x[jnp.arange(N), eot]                               # (N, D)
    return final_project(x_eot, params['lnf_g'], params['lnf_b'],
                         params['text_projection'])


# ----------------------------- pure-JAX reference ----------------------------
def reference_forward(prompts, tokenized_prompts, params, num_heads):
    f32, bf16 = jnp.float32, jnp.bfloat16
    x = prompts + params['pos'][None]
    N, L, D = x.shape
    H = num_heads
    dh = D // H
    scale = 1.0 / (dh ** 0.5)
    rows = jnp.arange(L)[:, None]
    cols = jnp.arange(L)[None, :]
    mask = jnp.where(cols > rows, -1e9, 0.0).astype(f32)
    num_layers = params['wqkv'].shape[0]
    for i in range(num_layers):
        xn = _layernorm(x, params['ln1_g'][i], params['ln1_b'][i])
        qkv = jnp.dot(xn.reshape(N * L, D).astype(bf16), params['wqkv'][i],
                      preferred_element_type=f32) + params['bqkv'][i]
        qkv = qkv.reshape(N, L, 3 * D)
        q = qkv[..., :D].reshape(N, L, H, dh).transpose(0, 2, 1, 3).astype(bf16)
        k = qkv[..., D:2 * D].reshape(N, L, H, dh).transpose(0, 2, 1, 3).astype(bf16)
        v = qkv[..., 2 * D:].reshape(N, L, H, dh).transpose(0, 2, 1, 3).astype(bf16)
        s = jnp.einsum('nhqd,nhkd->nhqk', q, k,
                       preferred_element_type=f32) * scale + mask
        p = jax.nn.softmax(s, axis=-1)
        o = jnp.einsum('nhqk,nhkd->nhqd', p.astype(bf16), v,
                       preferred_element_type=f32)
        o = o.transpose(0, 2, 1, 3).reshape(N * L, D)
        attn = jnp.dot(o.astype(bf16), params['wo'][i],
                       preferred_element_type=f32) + params['bo'][i]
        x = x + attn.reshape(N, L, D)
        xn = _layernorm(x, params['ln2_g'][i], params['ln2_b'][i])
        h = jnp.dot(xn.reshape(N * L, D).astype(bf16), params['wfc'][i],
                    preferred_element_type=f32) + params['bfc'][i]
        h = h * jax.nn.sigmoid(1.702 * h)
        mlp = jnp.dot(h.astype(bf16), params['wproj'][i],
                      preferred_element_type=f32) + params['bproj'][i]
        x = x + mlp.reshape(N, L, D)
    xn = _layernorm(x, params['lnf_g'], params['lnf_b'])
    eot = jnp.argmax(tokenized_prompts, axis=-1)
    xe = xn[jnp.arange(N), eot]
    return jnp.dot(xe.astype(bf16), params['text_projection'],
                   preferred_element_type=f32)


# --------------------------------- setup --------------------------------------
def make_params(key, L, D, E, num_layers):
    k = jax.random.split(key, 16)
    f32, bf16 = jnp.float32, jnp.bfloat16
    nrm = jax.random.normal
    return dict(
        pos=0.01 * nrm(k[12], (L, D), f32),
        # per-layer weights stacked along a leading layer axis (streamed)
        ln1_g=1.0 + 0.05 * nrm(k[0], (num_layers, 1, D), f32),
        ln1_b=0.02 * nrm(k[1], (num_layers, 1, D), f32),
        wqkv=(0.02 * nrm(k[2], (num_layers, D, 3 * D), f32)).astype(bf16),
        bqkv=0.02 * nrm(k[3], (num_layers, 1, 3 * D), f32),
        wo=(0.02 * nrm(k[4], (num_layers, D, D), f32)).astype(bf16),
        bo=0.02 * nrm(k[5], (num_layers, 1, D), f32),
        ln2_g=1.0 + 0.05 * nrm(k[6], (num_layers, 1, D), f32),
        ln2_b=0.02 * nrm(k[7], (num_layers, 1, D), f32),
        wfc=(0.02 * nrm(k[8], (num_layers, D, 4 * D), f32)).astype(bf16),
        bfc=0.02 * nrm(k[9], (num_layers, 1, 4 * D), f32),
        wproj=(0.02 * nrm(k[10], (num_layers, 4 * D, D), f32)).astype(bf16),
        bproj=0.02 * nrm(k[11], (num_layers, 1, D), f32),
        lnf_g=1.0 + 0.05 * nrm(k[13], (1, D), f32),
        lnf_b=0.02 * nrm(k[14], (1, D), f32),
        text_projection=(0.02 * nrm(k[15], (D, E), f32)).astype(bf16),
    )


if __name__ == "__main__":
    N, L, D, E = 2, 8, 32, 32          # batch, seq, width, embed dim
    NUM_HEADS, NUM_LAYERS = 4, 2

    key = jax.random.PRNGKey(0)
    k_prompts, k_tok, k_params = jax.random.split(key, 3)

    prompts = jax.random.normal(k_prompts, (N, L, D), jnp.float32)
    tokenized_prompts = jax.random.randint(k_tok, (N, L), 1, 100, jnp.int32)
    params = make_params(k_params, L, D, E, NUM_LAYERS)

    out = text_encoder_forward(prompts, tokenized_prompts, params, NUM_HEADS)
    out = jax.block_until_ready(out)

    ref = reference_forward(prompts, tokenized_prompts, params, NUM_HEADS)
    assert out.shape == (N, E)
    assert jnp.allclose(out, ref, atol=2e-2, rtol=2e-2), \
        float(jnp.max(jnp.abs(out - ref)))
    print("KERNEL_OK")
</pallas_src>

<mosaic_0001>
module attributes {stable_mosaic.version = 11 : i64} {
  func.func @encoder_kernel(%arg0: i32, %arg1: i32, %arg2: memref<2x8x32xf32, #tpu.memory_space<vmem>>, %arg3: memref<8x32xf32, #tpu.memory_space<vmem>>, %arg4: memref<1x1x32xf32, #tpu.memory_space<vmem>>, %arg5: memref<1x1x32xf32, #tpu.memory_space<vmem>>, %arg6: memref<1x32x96xbf16, #tpu.memory_space<vmem>>, %arg7: memref<1x1x96xf32, #tpu.memory_space<vmem>>, %arg8: memref<1x32x32xbf16, #tpu.memory_space<vmem>>, %arg9: memref<1x1x32xf32, #tpu.memory_space<vmem>>, %arg10: memref<1x1x32xf32, #tpu.memory_space<vmem>>, %arg11: memref<1x1x32xf32, #tpu.memory_space<vmem>>, %arg12: memref<1x32x128xbf16, #tpu.memory_space<vmem>>, %arg13: memref<1x1x128xf32, #tpu.memory_space<vmem>>, %arg14: memref<1x128x32xbf16, #tpu.memory_space<vmem>>, %arg15: memref<1x1x32xf32, #tpu.memory_space<vmem>>, %arg16: memref<2x8x32xf32, #tpu.memory_space<vmem>>, %arg17: memref<2x8x32xf32, #tpu.memory_space<vmem>>) attributes {dimension_semantics = [#tpu.dimension_semantics<parallel>, #tpu.dimension_semantics<arbitrary>], iteration_bounds = array<i64: 1, 2>, scalar_prefetch = 0 : i64, scratch_operands = 1 : i64, tpu.core_type = #tpu.core_type<tc>, window_params = [{transform_indices = @transform_0, window_bounds = array<i64: 2, 8, 32>}, {pipeline_mode = #tpu.pipeline_mode<synchronous>, transform_indices = @transform_1, window_bounds = array<i64: 8, 32>}, {transform_indices = @transform_2, window_bounds = array<i64: 1, 1, 32>}, {transform_indices = @transform_3, window_bounds = array<i64: 1, 1, 32>}, {transform_indices = @transform_4, window_bounds = array<i64: 1, 32, 96>}, {transform_indices = @transform_5, window_bounds = array<i64: 1, 1, 96>}, {transform_indices = @transform_6, window_bounds = array<i64: 1, 32, 32>}, {transform_indices = @transform_7, window_bounds = array<i64: 1, 1, 32>}, {transform_indices = @transform_8, window_bounds = array<i64: 1, 1, 32>}, {transform_indices = @transform_9, window_bounds = array<i64: 1, 1, 32>}, {transform_indices = @transform_10, window_bounds = array<i64: 1, 32, 128>}, {transform_indices = @transform_11, window_bounds = array<i64: 1, 1, 128>}, {transform_indices = @transform_12, window_bounds = array<i64: 1, 128, 32>}, {transform_indices = @transform_13, window_bounds = array<i64: 1, 1, 32>}, {transform_indices = @transform_14, window_bounds = array<i64: 2, 8, 32>}]} {
    %c0_i32 = arith.constant 0 : i32
    %0 = arith.cmpi eq, %arg1, %c0_i32 : i32
    %1 = arith.extui %0 : i1 to i32
    %c0_i32_0 = arith.constant 0 : i32
    %2 = arith.cmpi ne, %1, %c0_i32_0 : i32
    scf.if %2 {
      %c0_91 = arith.constant 0 : index
      %c0_92 = arith.constant 0 : index
      %c0_93 = arith.constant 0 : index
      %212 = vector.load %arg2[%c0_91, %c0_92, %c0_93] : memref<2x8x32xf32, #tpu.memory_space<vmem>>, vector<2x8x32xf32>
      %c0_94 = arith.constant 0 : index
      %c0_95 = arith.constant 0 : index
      %213 = vector.load %arg3[%c0_94, %c0_95] : memref<8x32xf32, #tpu.memory_space<vmem>>, vector<8x32xf32>
      %214 = vector.shape_cast %213 : vector<8x32xf32> to vector<1x8x32xf32>
      %215 = vector.broadcast %214 : vector<1x8x32xf32> to vector<2x8x32xf32>
      %216 = arith.addf %212, %215 : vector<2x8x32xf32>
      %c0_96 = arith.constant 0 : index
      %c0_97 = arith.constant 0 : index
      %c0_98 = arith.constant 0 : index
      %217 = vector.load %arg16[%c0_96, %c0_97, %c0_98] : memref<2x8x32xf32, #tpu.memory_space<vmem>>, vector<2x8x32xf32>
      tpu.vector_store %arg16[%c0_96, %c0_97, %c0_98], %216 {strides = array<i32>} : memref<2x8x32xf32, #tpu.memory_space<vmem>>, vector<2x8x32xf32>,
    } else {
    }
    %c0 = arith.constant 0 : index
    %c0_1 = arith.constant 0 : index
    %c0_2 = arith.constant 0 : index
    %3 = vector.load %arg16[%c0, %c0_1, %c0_2] : memref<2x8x32xf32, #tpu.memory_space<vmem>>, vector<2x8x32xf32>
    %4 = tpu.iota {dimensions = array<i32: 0>} : vector<8x8xi32>
    %5 = tpu.iota {dimensions = array<i32: 1>} : vector<8x8xi32>
    %6 = arith.cmpi sgt, %5, %4 : vector<8x8xi32>
    %cst = arith.constant -1.000000e+09 : f32
    %cst_3 = arith.constant 0.000000e+00 : f32
    %7 = vector.broadcast %cst : f32 to vector<8x8xf32>
    %8 = vector.broadcast %cst_3 : f32 to vector<8x8xf32>
    %9 = arith.select %6, %7, %8 : vector<8x8xi1>, vector<8x8xf32>
    %c0_4 = arith.constant 0 : index
    %c0_5 = arith.constant 0 : index
    %c0_6 = arith.constant 0 : index
    %10 = vector.load %arg4[%c0_4, %c0_5, %c0_6] : memref<1x1x32xf32, #tpu.memory_space<vmem>>, vector<1x1x32xf32>
    %11 = vector.shape_cast %10 : vector<1x1x32xf32> to vector<1x32xf32>
    %c0_7 = arith.constant 0 : index
    %c0_8 = arith.constant 0 : index
    %c0_9 = arith.constant 0 : index
    %12 = vector.load %arg5[%c0_7, %c0_8, %c0_9] : memref<1x1x32xf32, #tpu.memory_space<vmem>>, vector<1x1x32xf32>
    %13 = vector.shape_cast %12 : vector<1x1x32xf32> to vector<1x32xf32>
    %cst_10 = arith.constant dense<0.000000e+00> : vector<2x8xf32>
    %14 = vector.multi_reduction <add>, %3, %cst_10 [2] : vector<2x8x32xf32> to vector<2x8xf32>
    %15 = vector.shape_cast %14 : vector<2x8xf32> to vector<2x8x1xf32>
    %cst_11 = arith.constant 3.200000e+01 : f32
    %16 = vector.broadcast %cst_11 : f32 to vector<2x8x1xf32>
    %17 = arith.divf %15, %16 : vector<2x8x1xf32>
    %18 = vector.broadcast %17 : vector<2x8x1xf32> to vector<2x8x32xf32>
    %19 = arith.subf %3, %18 : vector<2x8x32xf32>
    %20 = arith.mulf %19, %19 : vector<2x8x32xf32>
    %cst_12 = arith.constant dense<0.000000e+00> : vector<2x8xf32>
    %21 = vector.multi_reduction <add>, %20, %cst_12 [2] : vector<2x8x32xf32> to vector<2x8xf32>
    %22 = vector.shape_cast %21 : vector<2x8xf32> to vector<2x8x1xf32>
    %cst_13 = arith.constant 3.200000e+01 : f32
    %23 = vector.broadcast %cst_13 : f32 to vector<2x8x1xf32>
    %24 = arith.divf %22, %23 : vector<2x8x1xf32>
    %25 = vector.broadcast %17 : vector<2x8x1xf32> to vector<2x8x32xf32>
    %26 = arith.subf %3, %25 : vector<2x8x32xf32>
    %cst_14 = arith.constant 9.99999974E-6 : f32
    %27 = vector.broadcast %cst_14 : f32 to vector<2x8x1xf32>
    %28 = arith.addf %24, %27 : vector<2x8x1xf32>
    %29 = math.rsqrt %28 : vector<2x8x1xf32>
    %30 = vector.broadcast %29 : vector<2x8x1xf32> to vector<2x8x32xf32>
    %31 = arith.mulf %26, %30 : vector<2x8x32xf32>
    %32 = vector.shape_cast %11 : vector<1x32xf32> to vector<1x1x32xf32>
    %33 = vector.broadcast %32 : vector<1x1x32xf32> to vector<2x8x32xf32>
    %34 = arith.mulf %31, %33 : vector<2x8x32xf32>
    %35 = vector.shape_cast %13 : vector<1x32xf32> to vector<1x1x32xf32>
    %36 = vector.broadcast %35 : vector<1x1x32xf32> to vector<2x8x32xf32>
    %37 = arith.addf %34, %36 : vector<2x8x32xf32>
    %38 = vector.shape_cast %37 : vector<2x8x32xf32> to vector<16x32xf32>
    %39 = arith.truncf %38 : vector<16x32xf32> to vector<16x32xbf16>
    %c0_15 = arith.constant 0 : index
    %c0_16 = arith.constant 0 : index
    %c0_17 = arith.constant 0 : index
    %40 = vector.load %arg6[%c0_15, %c0_16, %c0_17] : memref<1x32x96xbf16, #tpu.memory_space<vmem>>, vector<1x32x96xbf16>
    %41 = vector.shape_cast %40 : vector<1x32x96xbf16> to vector<32x96xbf16>
    %cst_18 = arith.constant dense<0.000000e+00> : vector<16x96xf32>
    %42 = tpu.matmul %39, %41, %cst_18 {dimension_numbers = #tpu.dot_dimension_numbers<[1], [0], [0], [1], [0, 0, 1, 1], [], []>} : vector<16x32xbf16>, vector<32x96xbf16>, vector<16x96xf32> -> vector<16x96xf32>
    %c0_19 = arith.constant 0 : index
    %c0_20 = arith.constant 0 : index
    %c0_21 = arith.constant 0 : index
    %43 = vector.load %arg7[%c0_19, %c0_20, %c0_21] : memref<1x1x96xf32, #tpu.memory_space<vmem>>, vector<1x1x96xf32>
    %44 = vector.shape_cast %43 : vector<1x1x96xf32> to vector<1x96xf32>
    %45 = vector.broadcast %44 : vector<1x96xf32> to vector<16x96xf32>
    %46 = arith.addf %42, %45 : vector<16x96xf32>
    %47 = vector.shape_cast %46 : vector<16x96xf32> to vector<2x8x96xf32>
    %48 = vector.extract_strided_slice %47 {offsets = [0, 0, 0], sizes = [2, 8, 8], strides = [1, 1, 1]} : vector<2x8x96xf32> to vector<2x8x8xf32>
    %49 = arith.truncf %48 : vector<2x8x8xf32> to vector<2x8x8xbf16>
    %50 = vector.extract_strided_slice %47 {offsets = [0, 0, 32], sizes = [2, 8, 8], strides = [1, 1, 1]} : vector<2x8x96xf32> to vector<2x8x8xf32>
    %51 = arith.truncf %50 : vector<2x8x8xf32> to vector<2x8x8xbf16>
    %52 = vector.extract_strided_slice %47 {offsets = [0, 0, 64], sizes = [2, 8, 8], strides = [1, 1, 1]} : vector<2x8x96xf32> to vector<2x8x8xf32>
    %53 = arith.truncf %52 : vector<2x8x8xf32> to vector<2x8x8xbf16>
    "tpu.trace_start"() <{level = 10 : i32, message = "bqd,bkd->bqk"}> : () -> ()
    %cst_22 = arith.constant dense<0.000000e+00> : vector<2x8x8xf32>
    %54 = tpu.matmul %49, %51, %cst_22 {dimension_numbers = #tpu.dot_dimension_numbers<[2], [2], [1], [1], [0, 0, 0, 1, 1, 1], [0], [0]>} : vector<2x8x8xbf16>, vector<2x8x8xbf16>, vector<2x8x8xf32> -> vector<2x8x8xf32>
    "tpu.trace_stop"() : () -> ()
    %cst_23 = arith.constant 0.353553385 : f32
    %55 = vector.broadcast %cst_23 : f32 to vector<2x8x8xf32>
    %56 = arith.mulf %54, %55 : vector<2x8x8xf32>
    %57 = vector.shape_cast %9 : vector<8x8xf32> to vector<1x8x8xf32>
    %58 = vector.broadcast %57 : vector<1x8x8xf32> to vector<2x8x8xf32>
    %59 = arith.addf %56, %58 : vector<2x8x8xf32>
    %cst_24 = arith.constant dense<0xFF800000> : vector<2x8xf32>
    %60 = vector.multi_reduction <maximumf>, %59, %cst_24 [2] : vector<2x8x8xf32> to vector<2x8xf32>
    %61 = vector.shape_cast %60 : vector<2x8xf32> to vector<2x8x1xf32>
    %62 = vector.broadcast %61 : vector<2x8x1xf32> to vector<2x8x8xf32>
    %63 = arith.subf %59, %62 : vector<2x8x8xf32>
    %64 = math.exp %63 : vector<2x8x8xf32>
    %cst_25 = arith.constant dense<0.000000e+00> : vector<2x8xf32>
    %65 = vector.multi_reduction <add>, %64, %cst_25 [2] : vector<2x8x8xf32> to vector<2x8xf32>
    %66 = vector.shape_cast %65 : vector<2x8xf32> to vector<2x8x1xf32>
    %67 = vector.broadcast %66 : vector<2x8x1xf32> to vector<2x8x8xf32>
    %68 = arith.divf %64, %67 : vector<2x8x8xf32>
    %69 = arith.truncf %68 : vector<2x8x8xf32> to vector<2x8x8xbf16>
    "tpu.trace_start"() <{level = 10 : i32, message = "bqk,bkd->bqd"}> : () -> ()
    %cst_26 = arith.constant dense<0.000000e+00> : vector<2x8x8xf32>
    %70 = tpu.matmul %69, %53, %cst_26 {dimension_numbers = #tpu.dot_dimension_numbers<[2], [1], [1], [2], [0, 0, 0, 1, 1, 2], [0], [0]>} : vector<2x8x8xbf16>, vector<2x8x8xbf16>, vector<2x8x8xf32> -> vector<2x8x8xf32>
    "tpu.trace_stop"() : () -> ()
    %c0_27 = arith.constant 0 : index
    %c0_28 = arith.constant 0 : index
    %c0_29 = arith.constant 0 : index
    %71 = vector.load %arg17[%c0_27, %c0_28, %c0_29] : memref<2x8x32xf32, #tpu.memory_space<vmem>>, vector<2x8x8xf32>
    tpu.vector_store %arg17[%c0_27, %c0_28, %c0_29], %70 {strides = array<i32>} : memref<2x8x32xf32, #tpu.memory_space<vmem>>, vector<2x8x8xf32>,
    %72 = vector.extract_strided_slice %47 {offsets = [0, 0, 8], sizes = [2, 8, 8], strides = [1, 1, 1]} : vector<2x8x96xf32> to vector<2x8x8xf32>
    %73 = arith.truncf %72 : vector<2x8x8xf32> to vector<2x8x8xbf16>
    %74 = vector.extract_strided_slice %47 {offsets = [0, 0, 40], sizes = [2, 8, 8], strides = [1, 1, 1]} : vector<2x8x96xf32> to vector<2x8x8xf32>
    %75 = arith.truncf %74 : vector<2x8x8xf32> to vector<2x8x8xbf16>
    %76 = vector.extract_strided_slice %47 {offsets = [0, 0, 72], sizes = [2, 8, 8], strides = [1, 1, 1]} : vector<2x8x96xf32> to vector<2x8x8xf32>
    %77 = arith.truncf %76 : vector<2x8x8xf32> to vector<2x8x8xbf16>
    "tpu.trace_start"() <{level = 10 : i32, message = "bqd,bkd->bqk"}> : () -> ()
    %cst_30 = arith.constant dense<0.000000e+00> : vector<2x8x8xf32>
    %78 = tpu.matmul %73, %75, %cst_30 {dimension_numbers = #tpu.dot_dimension_numbers<[2], [2], [1], [1], [0, 0, 0, 1, 1, 1], [0], [0]>} : vector<2x8x8xbf16>, vector<2x8x8xbf16>, vector<2x8x8xf32> -> vector<2x8x8xf32>
    "tpu.trace_stop"() : () -> ()
    %cst_31 = arith.constant 0.353553385 : f32
    %79 = vector.broadcast %cst_31 : f32 to vector<2x8x8xf32>
    %80 = arith.mulf %78, %79 : vector<2x8x8xf32>
    %81 = vector.shape_cast %9 : vector<8x8xf32> to vector<1x8x8xf32>
    %82 = vector.broadcast %81 : vector<1x8x8xf32> to vector<2x8x8xf32>
    %83 = arith.addf %80, %82 : vector<2x8x8xf32>
    %cst_32 = arith.constant dense<0xFF800000> : vector<2x8xf32>
    %84 = vector.multi_reduction <maximumf>, %83, %cst_32 [2] : vector<2x8x8xf32> to vector<2x8xf32>
    %85 = vector.shape_cast %84 : vector<2x8xf32> to vector<2x8x1xf32>
    %86 = vector.broadcast %85 : vector<2x8x1xf32> to vector<2x8x8xf32>
    %87 = arith.subf %83, %86 : vector<2x8x8xf32>
    %88 = math.exp %87 : vector<2x8x8xf32>
    %cst_33 = arith.constant dense<0.000000e+00> : vector<2x8xf32>
    %89 = vector.multi_reduction <add>, %88, %cst_33 [2] : vector<2x8x8xf32> to vector<2x8xf32>
    %90 = vector.shape_cast %89 : vector<2x8xf32> to vector<2x8x1xf32>
    %91 = vector.broadcast %90 : vector<2x8x1xf32> to vector<2x8x8xf32>
    %92 = arith.divf %88, %91 : vector<2x8x8xf32>
    %93 = arith.truncf %92 : vector<2x8x8xf32> to vector<2x8x8xbf16>
    "tpu.trace_start"() <{level = 10 : i32, message = "bqk,bkd->bqd"}> : () -> ()
    %cst_34 = arith.constant dense<0.000000e+00> : vector<2x8x8xf32>
    %94 = tpu.matmul %93, %77, %cst_34 {dimension_numbers = #tpu.dot_dimension_numbers<[2], [1], [1], [2], [0, 0, 0, 1, 1, 2], [0], [0]>} : vector<2x8x8xbf16>, vector<2x8x8xbf16>, vector<2x8x8xf32> -> vector<2x8x8xf32>
    "tpu.trace_stop"() : () -> ()
    %c0_35 = arith.constant 0 : index
    %c0_36 = arith.constant 0 : index
    %c8 = arith.constant 8 : index
    %95 = vector.load %arg17[%c0_35, %c0_36, %c8] : memref<2x8x32xf32, #tpu.memory_space<vmem>>, vector<2x8x8xf32>
    tpu.vector_store %arg17[%c0_35, %c0_36, %c8], %94 {strides = array<i32>} : memref<2x8x32xf32, #tpu.memory_space<vmem>>, vector<2x8x8xf32>,
    %96 = vector.extract_strided_slice %47 {offsets = [0, 0, 16], sizes = [2, 8, 8], strides = [1, 1, 1]} : vector<2x8x96xf32> to vector<2x8x8xf32>
    %97 = arith.truncf %96 : vector<2x8x8xf32> to vector<2x8x8xbf16>
    %98 = vector.extract_strided_slice %47 {offsets = [0, 0, 48], sizes = [2, 8, 8], strides = [1, 1, 1]} : vector<2x8x96xf32> to vector<2x8x8xf32>
    %99 = arith.truncf %98 : vector<2x8x8xf32> to vector<2x8x8xbf16>
    %100 = vector.extract_strided_slice %47 {offsets = [0, 0, 80], sizes = [2, 8, 8], strides = [1, 1, 1]} : vector<2x8x96xf32> to vector<2x8x8xf32>
    %101 = arith.truncf %100 : vector<2x8x8xf32> to vector<2x8x8xbf16>
    "tpu.trace_start"() <{level = 10 : i32, message = "bqd,bkd->bqk"}> : () -> ()
    %cst_37 = arith.constant dense<0.000000e+00> : vector<2x8x8xf32>
    %102 = tpu.matmul %97, %99, %cst_37 {dimension_numbers = #tpu.dot_dimension_numbers<[2], [2], [1], [1], [0, 0, 0, 1, 1, 1], [0], [0]>} : vector<2x8x8xbf16>, vector<2x8x8xbf16>, vector<2x8x8xf32> -> vector<2x8x8xf32>
    "tpu.trace_stop"() : () -> ()
    %cst_38 = arith.constant 0.353553385 : f32
    %103 = vector.broadcast %cst_38 : f32 to vector<2x8x8xf32>
    %104 = arith.mulf %102, %103 : vector<2x8x8xf32>
    %105 = vector.shape_cast %9 : vector<8x8xf32> to vector<1x8x8xf32>
    %106 = vector.broadcast %105 : vector<1x8x8xf32> to vector<2x8x8xf32>
    %107 = arith.addf %104, %106 : vector<2x8x8xf32>
    %cst_39 = arith.constant dense<0xFF800000> : vector<2x8xf32>
    %108 = vector.multi_reduction <maximumf>, %107, %cst_39 [2] : vector<2x8x8xf32> to vector<2x8xf32>
    %109 = vector.shape_cast %108 : vector<2x8xf32> to vector<2x8x1xf32>
    %110 = vector.broadcast %109 : vector<2x8x1xf32> to vector<2x8x8xf32>
    %111 = arith.subf %107, %110 : vector<2x8x8xf32>
    %112 = math.exp %111 : vector<2x8x8xf32>
    %cst_40 = arith.constant dense<0.000000e+00> : vector<2x8xf32>
    %113 = vector.multi_reduction <add>, %112, %cst_40 [2] : vector<2x8x8xf32> to vector<2x8xf32>
    %114 = vector.shape_cast %113 : vector<2x8xf32> to vector<2x8x1xf32>
    %115 = vector.broadcast %114 : vector<2x8x1xf32> to vector<2x8x8xf32>
    %116 = arith.divf %112, %115 : vector<2x8x8xf32>
    %117 = arith.truncf %116 : vector<2x8x8xf32> to vector<2x8x8xbf16>
    "tpu.trace_start"() <{level = 10 : i32, message = "bqk,bkd->bqd"}> : () -> ()
    %cst_41 = arith.constant dense<0.000000e+00> : vector<2x8x8xf32>
    %118 = tpu.matmul %117, %101, %cst_41 {dimension_numbers = #tpu.dot_dimension_numbers<[2], [1], [1], [2], [0, 0, 0, 1, 1, 2], [0], [0]>} : vector<2x8x8xbf16>, vector<2x8x8xbf16>, vector<2x8x8xf32> -> vector<2x8x8xf32>
    "tpu.trace_stop"() : () -> ()
    %c0_42 = arith.constant 0 : index
    %c0_43 = arith.constant 0 : index
    %c16 = arith.constant 16 : index
    %119 = vector.load %arg17[%c0_42, %c0_43, %c16] : memref<2x8x32xf32, #tpu.memory_space<vmem>>, vector<2x8x8xf32>
    tpu.vector_store %arg17[%c0_42, %c0_43, %c16], %118 {strides = array<i32>} : memref<2x8x32xf32, #tpu.memory_space<vmem>>, vector<2x8x8xf32>,
    %120 = vector.extract_strided_slice %47 {offsets = [0, 0, 24], sizes = [2, 8, 8], strides = [1, 1, 1]} : vector<2x8x96xf32> to vector<2x8x8xf32>
    %121 = arith.truncf %120 : vector<2x8x8xf32> to vector<2x8x8xbf16>
    %122 = vector.extract_strided_slice %47 {offsets = [0, 0, 56], sizes = [2, 8, 8], strides = [1, 1, 1]} : vector<2x8x96xf32> to vector<2x8x8xf32>
    %123 = arith.truncf %122 : vector<2x8x8xf32> to vector<2x8x8xbf16>
    %124 = vector.extract_strided_slice %47 {offsets = [0, 0, 88], sizes = [2, 8, 8], strides = [1, 1, 1]} : vector<2x8x96xf32> to vector<2x8x8xf32>
    %125 = arith.truncf %124 : vector<2x8x8xf32> to vector<2x8x8xbf16>
    "tpu.trace_start"() <{level = 10 : i32, message = "bqd,bkd->bqk"}> : () -> ()
    %cst_44 = arith.constant dense<0.000000e+00> : vector<2x8x8xf32>
    %126 = tpu.matmul %121, %123, %cst_44 {dimension_numbers = #tpu.dot_dimension_numbers<[2], [2], [1], [1], [0, 0, 0, 1, 1, 1], [0], [0]>} : vector<2x8x8xbf16>, vector<2x8x8xbf16>, vector<2x8x8xf32> -> vector<2x8x8xf32>
    "tpu.trace_stop"() : () -> ()
    %cst_45 = arith.constant 0.353553385 : f32
    %127 = vector.broadcast %cst_45 : f32 to vector<2x8x8xf32>
    %128 = arith.mulf %126, %127 : vector<2x8x8xf32>
    %129 = vector.shape_cast %9 : vector<8x8xf32> to vector<1x8x8xf32>
    %130 = vector.broadcast %129 : vector<1x8x8xf32> to vector<2x8x8xf32>
    %131 = arith.addf %128, %130 : vector<2x8x8xf32>
    %cst_46 = arith.constant dense<0xFF800000> : vector<2x8xf32>
    %132 = vector.multi_reduction <maximumf>, %131, %cst_46 [2] : vector<2x8x8xf32> to vector<2x8xf32>
    %133 = vector.shape_cast %132 : vector<2x8xf32> to vector<2x8x1xf32>
    %134 = vector.broadcast %133 : vector<2x8x1xf32> to vector<2x8x8xf32>
    %135 = arith.subf %131, %134 : vector<2x8x8xf32>
    %136 = math.exp %135 : vector<2x8x8xf32>
    %cst_47 = arith.constant dense<0.000000e+00> : vector<2x8xf32>
    %137 = vector.multi_reduction <add>, %136, %cst_47 [2] : vector<2x8x8xf32> to vector<2x8xf32>
    %138 = vector.shape_cast %137 : vector<2x8xf32> to vector<2x8x1xf32>
    %139 = vector.broadcast %138 : vector<2x8x1xf32> to vector<2x8x8xf32>
    %140 = arith.divf %136, %139 : vector<2x8x8xf32>
    %141 = arith.truncf %140 : vector<2x8x8xf32> to vector<2x8x8xbf16>
    "tpu.trace_start"() <{level = 10 : i32, message = "bqk,bkd->bqd"}> : () -> ()
    %cst_48 = arith.constant dense<0.000000e+00> : vector<2x8x8xf32>
    %142 = tpu.matmul %141, %125, %cst_48 {dimension_numbers = #tpu.dot_dimension_numbers<[2], [1], [1], [2], [0, 0, 0, 1, 1, 2], [0], [0]>} : vector<2x8x8xbf16>, vector<2x8x8xbf16>, vector<2x8x8xf32> -> vector<2x8x8xf32>
    "tpu.trace_stop"() : () -> ()
    %c0_49 = arith.constant 0 : index
    %c0_50 = arith.constant 0 : index
    %c24 = arith.constant 24 : index
    %143 = vector.load %arg17[%c0_49, %c0_50, %c24] : memref<2x8x32xf32, #tpu.memory_space<vmem>>, vector<2x8x8xf32>
    tpu.vector_store %arg17[%c0_49, %c0_50, %c24], %142 {strides = array<i32>} : memref<2x8x32xf32, #tpu.memory_space<vmem>>, vector<2x8x8xf32>,
    %c0_51 = arith.constant 0 : index
    %c0_52 = arith.constant 0 : index
    %c0_53 = arith.constant 0 : index
    %144 = vector.load %arg17[%c0_51, %c0_52, %c0_53] : memref<2x8x32xf32, #tpu.memory_space<vmem>>, vector<2x8x32xf32>
    %145 = vector.shape_cast %144 : vector<2x8x32xf32> to vector<16x32xf32>
    %146 = arith.truncf %145 : vector<16x32xf32> to vector<16x32xbf16>
    %c0_54 = arith.constant 0 : index
    %c0_55 = arith.constant 0 : index
    %c0_56 = arith.constant 0 : index
    %147 = vector.load %arg8[%c0_54, %c0_55, %c0_56] : memref<1x32x32xbf16, #tpu.memory_space<vmem>>, vector<1x32x32xbf16>
    %148 = vector.shape_cast %147 : vector<1x32x32xbf16> to vector<32x32xbf16>
    %cst_57 = arith.constant dense<0.000000e+00> : vector<16x32xf32>
    %149 = tpu.matmul %146, %148, %cst_57 {dimension_numbers = #tpu.dot_dimension_numbers<[1], [0], [0], [1], [0, 0, 1, 1], [], []>} : vector<16x32xbf16>, vector<32x32xbf16>, vector<16x32xf32> -> vector<16x32xf32>
    %c0_58 = arith.constant 0 : index
    %c0_59 = arith.constant 0 : index
    %c0_60 = arith.constant 0 : index
    %150 = vector.load %arg9[%c0_58, %c0_59, %c0_60] : memref<1x1x32xf32, #tpu.memory_space<vmem>>, vector<1x1x32xf32>
    %151 = vector.shape_cast %150 : vector<1x1x32xf32> to vector<1x32xf32>
    %152 = vector.broadcast %151 : vector<1x32xf32> to vector<16x32xf32>
    %153 = arith.addf %149, %152 : vector<16x32xf32>
    %154 = vector.shape_cast %153 : vector<16x32xf32> to vector<2x8x32xf32>
    %155 = arith.addf %3, %154 : vector<2x8x32xf32>
    %c0_61 = arith.constant 0 : index
    %c0_62 = arith.constant 0 : index
    %c0_63 = arith.constant 0 : index
    %156 = vector.load %arg10[%c0_61, %c0_62, %c0_63] : memref<1x1x32xf32, #tpu.memory_space<vmem>>, vector<1x1x32xf32>
    %157 = vector.shape_cast %156 : vector<1x1x32xf32> to vector<1x32xf32>
    %c0_64 = arith.constant 0 : index
    %c0_65 = arith.constant 0 : index
    %c0_66 = arith.constant 0 : index
    %158 = vector.load %arg11[%c0_64, %c0_65, %c0_66] : memref<1x1x32xf32, #tpu.memory_space<vmem>>, vector<1x1x32xf32>
    %159 = vector.shape_cast %158 : vector<1x1x32xf32> to vector<1x32xf32>
    %cst_67 = arith.constant dense<0.000000e+00> : vector<2x8xf32>
    %160 = vector.multi_reduction <add>, %155, %cst_67 [2] : vector<2x8x32xf32> to vector<2x8xf32>
    %161 = vector.shape_cast %160 : vector<2x8xf32> to vector<2x8x1xf32>
    %cst_68 = arith.constant 3.200000e+01 : f32
    %162 = vector.broadcast %cst_68 : f32 to vector<2x8x1xf32>
    %163 = arith.divf %161, %162 : vector<2x8x1xf32>
    %164 = vector.broadcast %163 : vector<2x8x1xf32> to vector<2x8x32xf32>
    %165 = arith.subf %155, %164 : vector<2x8x32xf32>
    %166 = arith.mulf %165, %165 : vector<2x8x32xf32>
    %cst_69 = arith.constant dense<0.000000e+00> : vector<2x8xf32>
    %167 = vector.multi_reduction <add>, %166, %cst_69 [2] : vector<2x8x32xf32> to vector<2x8xf32>
    %168 = vector.shape_cast %167 : vector<2x8xf32> to vector<2x8x1xf32>
    %cst_70 = arith.constant 3.200000e+01 : f32
    %169 = vector.broadcast %cst_70 : f32 to vector<2x8x1xf32>
    %170 = arith.divf %168, %169 : vector<2x8x1xf32>
    %171 = vector.broadcast %163 : vector<2x8x1xf32> to vector<2x8x32xf32>
    %172 = arith.subf %155, %171 : vector<2x8x32xf32>
    %cst_71 = arith.constant 9.99999974E-6 : f32
    %173 = vector.broadcast %cst_71 : f32 to vector<2x8x1xf32>
    %174 = arith.addf %170, %173 : vector<2x8x1xf32>
    %175 = math.rsqrt %174 : vector<2x8x1xf32>
    %176 = vector.broadcast %175 : vector<2x8x1xf32> to vector<2x8x32xf32>
    %177 = arith.mulf %172, %176 : vector<2x8x32xf32>
    %178 = vector.shape_cast %157 : vector<1x32xf32> to vector<1x1x32xf32>
    %179 = vector.broadcast %178 : vector<1x1x32xf32> to vector<2x8x32xf32>
    %180 = arith.mulf %177, %179 : vector<2x8x32xf32>
    %181 = vector.shape_cast %159 : vector<1x32xf32> to vector<1x1x32xf32>
    %182 = vector.broadcast %181 : vector<1x1x32xf32> to vector<2x8x32xf32>
    %183 = arith.addf %180, %182 : vector<2x8x32xf32>
    %184 = vector.shape_cast %183 : vector<2x8x32xf32> to vector<16x32xf32>
    %185 = arith.truncf %184 : vector<16x32xf32> to vector<16x32xbf16>
    %c0_72 = arith.constant 0 : index
    %c0_73 = arith.constant 0 : index
    %c0_74 = arith.constant 0 : index
    %186 = vector.load %arg12[%c0_72, %c0_73, %c0_74] : memref<1x32x128xbf16, #tpu.memory_space<vmem>>, vector<1x32x128xbf16>
    %187 = vector.shape_cast %186 : vector<1x32x128xbf16> to vector<32x128xbf16>
    %cst_75 = arith.constant dense<0.000000e+00> : vector<16x128xf32>
    %188 = tpu.matmul %185, %187, %cst_75 {dimension_numbers = #tpu.dot_dimension_numbers<[1], [0], [0], [1], [0, 0, 1, 1], [], []>} : vector<16x32xbf16>, vector<32x128xbf16>, vector<16x128xf32> -> vector<16x128xf32>
    %c0_76 = arith.constant 0 : index
    %c0_77 = arith.constant 0 : index
    %c0_78 = arith.constant 0 : index
    %189 = vector.load %arg13[%c0_76, %c0_77, %c0_78] : memref<1x1x128xf32, #tpu.memory_space<vmem>>, vector<1x1x128xf32>
    %190 = vector.shape_cast %189 : vector<1x1x128xf32> to vector<1x128xf32>
    %191 = vector.broadcast %190 : vector<1x128xf32> to vector<16x128xf32>
    %192 = arith.addf %188, %191 : vector<16x128xf32>
    %cst_79 = arith.constant 1.702000e+00 : f32
    %193 = vector.broadcast %cst_79 : f32 to vector<16x128xf32>
    %194 = arith.mulf %193, %192 : vector<16x128xf32>
    %195 = arith.negf %194 : vector<16x128xf32>
    %196 = math.exp %195 : vector<16x128xf32>
    %cst_80 = arith.constant 1.000000e+00 : f32
    %197 = vector.broadcast %cst_80 : f32 to vector<16x128xf32>
    %198 = arith.addf %197, %196 : vector<16x128xf32>
    %199 = arith.divf %197, %198 : vector<16x128xf32>
    %200 = arith.mulf %192, %199 : vector<16x128xf32>
    %201 = arith.truncf %200 : vector<16x128xf32> to vector<16x128xbf16>
    %c0_81 = arith.constant 0 : index
    %c0_82 = arith.constant 0 : index
    %c0_83 = arith.constant 0 : index
    %202 = vector.load %arg14[%c0_81, %c0_82, %c0_83] : memref<1x128x32xbf16, #tpu.memory_space<vmem>>, vector<1x128x32xbf16>
    %203 = vector.shape_cast %202 : vector<1x128x32xbf16> to vector<128x32xbf16>
    %cst_84 = arith.constant dense<0.000000e+00> : vector<16x32xf32>
    %204 = tpu.matmul %201, %203, %cst_84 {dimension_numbers = #tpu.dot_dimension_numbers<[1], [0], [0], [1], [0, 0, 1, 1], [], []>} : vector<16x128xbf16>, vector<128x32xbf16>, vector<16x32xf32> -> vector<16x32xf32>
    %c0_85 = arith.constant 0 : index
    %c0_86 = arith.constant 0 : index
    %c0_87 = arith.constant 0 : index
    %205 = vector.load %arg15[%c0_85, %c0_86, %c0_87] : memref<1x1x32xf32, #tpu.memory_space<vmem>>, vector<1x1x32xf32>
    %206 = vector.shape_cast %205 : vector<1x1x32xf32> to vector<1x32xf32>
    %207 = vector.broadcast %206 : vector<1x32xf32> to vector<16x32xf32>
    %208 = arith.addf %204, %207 : vector<16x32xf32>
    %209 = vector.shape_cast %208 : vector<16x32xf32> to vector<2x8x32xf32>
    %210 = arith.addf %155, %209 : vector<2x8x32xf32>
    %c0_88 = arith.constant 0 : index
    %c0_89 = arith.constant 0 : index
    %c0_90 = arith.constant 0 : index
    %211 = vector.load %arg16[%c0_88, %c0_89, %c0_90] : memref<2x8x32xf32, #tpu.memory_space<vmem>>, vector<2x8x32xf32>
    tpu.vector_store %arg16[%c0_88, %c0_89, %c0_90], %210 {strides = array<i32>} : memref<2x8x32xf32, #tpu.memory_space<vmem>>, vector<2x8x32xf32>,
    return
  }
  func.func @transform_0(%arg0: i32, %arg1: i32) -> (i32, i32, i32) {
    %c0_i32 = arith.constant 0 : i32
    %c0_i32_0 = arith.constant 0 : i32
    %c0_i32_1 = arith.constant 0 : i32
    return %arg0, %c0_i32, %c0_i32_0 : i32, i32, i32
  }
  func.func @transform_1(%arg0: i32, %arg1: i32) -> (i32, i32) {
    %c0_i32 = arith.constant 0 : i32
    %c0_i32_0 = arith.constant 0 : i32
    %c0_i32_1 = arith.constant 0 : i32
    return %c0_i32, %c0_i32_0 : i32, i32
  }
  func.func @transform_2(%arg0: i32, %arg1: i32) -> (i32, i32, i32) {
    %c0_i32 = arith.constant 0 : i32
    %c0_i32_0 = arith.constant 0 : i32
    %c0_i32_1 = arith.constant 0 : i32
    return %arg1, %c0_i32, %c0_i32_0 : i32, i32, i32
  }
  func.func @transform_3(%arg0: i32, %arg1: i32) -> (i32, i32, i32) {
    %c0_i32 = arith.constant 0 : i32
    %c0_i32_0 = arith.constant 0 : i32
    %c0_i32_1 = arith.constant 0 : i32
    return %arg1, %c0_i32, %c0_i32_0 : i32, i32, i32
  }
  func.func @transform_4(%arg0: i32, %arg1: i32) -> (i32, i32, i32) {
    %c0_i32 = arith.constant 0 : i32
    %c0_i32_0 = arith.constant 0 : i32
    %c0_i32_1 = arith.constant 0 : i32
    return %arg1, %c0_i32, %c0_i32_0 : i32, i32, i32
  }
  func.func @transform_5(%arg0: i32, %arg1: i32) -> (i32, i32, i32) {
    %c0_i32 = arith.constant 0 : i32
    %c0_i32_0 = arith.constant 0 : i32
    %c0_i32_1 = arith.constant 0 : i32
    return %arg1, %c0_i32, %c0_i32_0 : i32, i32, i32
  }
  func.func @transform_6(%arg0: i32, %arg1: i32) -> (i32, i32, i32) {
    %c0_i32 = arith.constant 0 : i32
    %c0_i32_0 = arith.constant 0 : i32
    %c0_i32_1 = arith.constant 0 : i32
    return %arg1, %c0_i32, %c0_i32_0 : i32, i32, i32
  }
  func.func @transform_7(%arg0: i32, %arg1: i32) -> (i32, i32, i32) {
    %c0_i32 = arith.constant 0 : i32
    %c0_i32_0 = arith.constant 0 : i32
    %c0_i32_1 = arith.constant 0 : i32
    return %arg1, %c0_i32, %c0_i32_0 : i32, i32, i32
  }
  func.func @transform_8(%arg0: i32, %arg1: i32) -> (i32, i32, i32) {
    %c0_i32 = arith.constant 0 : i32
    %c0_i32_0 = arith.constant 0 : i32
    %c0_i32_1 = arith.constant 0 : i32
    return %arg1, %c0_i32, %c0_i32_0 : i32, i32, i32
  }
  func.func @transform_9(%arg0: i32, %arg1: i32) -> (i32, i32, i32) {
    %c0_i32 = arith.constant 0 : i32
    %c0_i32_0 = arith.constant 0 : i32
    %c0_i32_1 = arith.constant 0 : i32
    return %arg1, %c0_i32, %c0_i32_0 : i32, i32, i32
  }
  func.func @transform_10(%arg0: i32, %arg1: i32) -> (i32, i32, i32) {
    %c0_i32 = arith.constant 0 : i32
    %c0_i32_0 = arith.constant 0 : i32
    %c0_i32_1 = arith.constant 0 : i32
    return %arg1, %c0_i32, %c0_i32_0 : i32, i32, i32
  }
  func.func @transform_11(%arg0: i32, %arg1: i32) -> (i32, i32, i32) {
    %c0_i32 = arith.constant 0 : i32
    %c0_i32_0 = arith.constant 0 : i32
    %c0_i32_1 = arith.constant 0 : i32
    return %arg1, %c0_i32, %c0_i32_0 : i32, i32, i32
  }
  func.func @transform_12(%arg0: i32, %arg1: i32) -> (i32, i32, i32) {
    %c0_i32 = arith.constant 0 : i32
    %c0_i32_0 = arith.constant 0 : i32
    %c0_i32_1 = arith.constant 0 : i32
    return %arg1, %c0_i32, %c0_i32_0 : i32, i32, i32
  }
  func.func @transform_13(%arg0: i32, %arg1: i32) -> (i32, i32, i32) {
    %c0_i32 = arith.constant 0 : i32
    %c0_i32_0 = arith.constant 0 : i32
    %c0_i32_1 = arith.constant 0 : i32
    return %arg1, %c0_i32, %c0_i32_0 : i32, i32, i32
  }
  func.func @transform_14(%arg0: i32, %arg1: i32) -> (i32, i32, i32) {
    %c0_i32 = arith.constant 0 : i32
    %c0_i32_0 = arith.constant 0 : i32
    %c0_i32_1 = arith.constant 0 : i32
    return %arg0, %c0_i32, %c0_i32_0 : i32, i32, i32
  }
}

</mosaic_0001>

<bundles_post_ra>
// kernel: tpu_custom_call.1
= control target key start
LH: loop header
LB: loop body
LE: loop exit
PB: predicated region body
PF: predicated region fallthrough
CT: control target
= control target key end

     0   :  { %s3128_s0 = inlined_call_operand.vmem [shape: f32[2,8,32], index: 0, kind: input, shape index: {}]   ;;  %s3129_s1 = inlined_call_operand.vmem [shape: f32[8,32], index: 1, kind: input, shape index: {}]   ;;  %s3130_s2 = inlined_call_operand.vmem [shape: f32[2,1,32], index: 2, kind: input, shape index: {}]   ;;  %s3131_s3 = inlined_call_operand.vmem [shape: f32[2,1,32], index: 3, kind: input, shape index: {}]   ;;  %s3132_s4 = inlined_call_operand.vmem [shape: bf16[2,32,96], index: 4, kind: input, shape index: {}]   ;;  %s3133_s5 = inlined_call_operand.vmem [shape: f32[2,1,96], index: 5, kind: input, shape index: {}]   ;;  %s3134_s6 = inlined_call_operand.vmem [shape: bf16[2,32,32], index: 6, kind: input, shape index: {}]   ;;  %s3135_s7 = inlined_call_operand.vmem [shape: f32[2,1,32], index: 7, kind: input, shape index: {}]   ;;  %s3136_s8 = inlined_call_operand.vmem [shape: f32[2,1,32], index: 8, kind: input, shape index: {}]   ;;  %s3137_s9 = inlined_call_operand.vmem [shape: f32[2,1,32], index: 9, kind: input, shape index: {}]   ;;  %s3138_s10 = inlined_call_operand.vmem [shape: bf16[2,32,128], index: 10, kind: input, shape index: {}]   ;;  %s3139_s11 = inlined_call_operand.vmem [shape: f32[2,1,128], index: 11, kind: input, shape index: {}]   ;;  %s3140_s12 = inlined_call_operand.vmem [shape: bf16[2,128,32], index: 12, kind: input, shape index: {}]   ;;  %s3141_s13 = inlined_call_operand.vmem [shape: f32[2,1,32], index: 13, kind: input, shape index: {}]   ;;  %s3142_s14 = inlined_call_operand.hbm [shape: f32[2,8,32], index: 14, kind: output, shape index: {}]  }
   0x1   :  { %3147 = sst [smem:[#allocation10_spill]] %s3131_s3 }
   0x2   :  { %3148 = sst [smem:[#allocation11_spill]] %s3132_s4 }
   0x3   :  { %3149 = sst [smem:[#allocation12_spill]] %s3134_s6 }
   0x4   :  { %3150 = sst [smem:[#allocation13_spill]] %s3142_s14 }
   0x5   :  { %19 = vsyncpa [#allocation4], 0  ;;  %s2748_s29 = smov 0   ;;  %s2750_s30 = smov 0  }
   0x6   :  { %s2752_s15 = smov 0  }
   0x7 LB: > { %3151 = sst [smem:[#allocation6_spill]] %s2649_s30  ;;  %s34_s17 = sadd.s32 1, %s2649_s30  ;;  %s2653_s15 = sphi %s2752_s15, %s25_s15   ;;  %s2649_s30 = sphi %s2750_s30, %s3170_s30   ;;  %s2645_s29 = sphi %s2748_s29, %s3169_s29  }
   0x8   : > { %3152 = sst [smem:[#allocation7_spill]] %s2653_s15  ;;  %p35_p0 = scmp.ge.s32.totalorder %s34_s17, 2 }
   0x9   : > { %p2240_p1 = scmp.ge.s32.totalorder %s2653_s15, 1  ;;  %p530_p2 = scmp.lt.s32.totalorder %s2653_s15, 3 }
   0xa   : > { %s3172_s17 = smov (%p35_p0, %s34_s17), 0 }
   0xb   : > { %3153 = sst [smem:[#allocation8_spill]] %s3172_s17  ;;  %p531_p3 = pnand %p2240_p1, %p530_p2 }
   0xd   : > { %534 = sbr.rel (%p531_p3) target bundleno = 4217 (0x1079), region = 76 }
  0x14   : > { %p621_p4 = scmp.lt.s32.totalorder %s2645_s29, 1  ;;  %s3155_s4 = sld [smem:[#allocation11_spill]] }
  0x15   : > { %s3156_s6 = sld [smem:[#allocation12_spill]]  ;;  %p2249_p5 = scmp.ne.s32.totalorder %s2645_s29, 0 }
  0x16   : > { %s2767_s18 = scalar_select %p621_p4, %s2645_s29, 1 }
  0x17   : > { %670 = sbr.rel (%p2249_p5) target bundleno = 30 (0x1e), region = 80  ;;  %v671_v0 = vld [vmem:[%s3128_s0] sm:$0xff] (!%p2249_p5)  ;;  %vm676_vm0 = vcmask (!%p2249_p5), 261120   ;;  %v672_v2 = vld [vmem:[%s3128_s0 + $0x8] sm:$0xff] (!%p2249_p5) }
  0x18   : > { %s2297_s25 = sshll.u32 %s2767_s18, 4  ;;  %s645_s3 = scalar_lea.vmem %s3136_s8, %s2767_s18  ;;  %v673_v1 = vld [vmem:[%s3129_s1] sm:$0xff] (!%p2249_p5) }
  0x19   : > { %s648_s28 = scalar_lea.vmem %s3137_s9, %s2767_s18  ;;  %s664_s26 = scalar_lea.vmem %s3141_s13, %s2767_s18  ;;  %v674_v3 = vadd.f32 (!%p2249_p5), %v673_v1, %v671_v0  ;;  %v675_v4 = vadd.f32 (!%p2249_p5), %v673_v1, %v672_v2 }
  0x1a   : > { %s2785_s16 = scalar_lea.vmem %s3155_s4, %s2297_s25  ;;  %s2807_s4 = scalar_lea.vmem %s3138_s10, %s2297_s25 }
  0x1b   : > { %s2790_s14 = scalar_lea.vmem %s3156_s6, %s2297_s25  ;;  %s656_s6 = scalar_lea.vmem %s3139_s11, %s2767_s18  ;;  %677 = vst.msk [vmem:[#allocation3] sm:$0xff] (!%p2249_p5), %vm676_vm0, %v674_v3  ;;  %678 = vst.msk [vmem:[#allocation3 + $0x8] sm:$0xff] (!%p2249_p5), %vm676_vm0, %v675_v4 }
  0x1c   : > { %3157 = sst [smem:[#allocation9_spill]] %s2790_s14  ;;  %s2300_s14 = sshll.u32 %s2767_s18, 6 }
  0x1d   : > { %s2817_s22 = scalar_lea.vmem %s3140_s12, %s2300_s14 }
  0x1e PF: > { %vm689_vm1 = vcmask 261120   ;;  %v2539_v19 = vld [vmem:[%s2785_s16] sm:$0xff]   ;;  %v2655_v20 = vmov 0.0   ;;  %v2540_v21 = vld [vmem:[%s2785_s16 + $0x8] sm:$0xff]   ;;  %vm2656_vm2 = vmmov 0   ;;  %s3158_s16 = scalar_lea.vmem %s3130_s2, %s2767_s18  ;;  %s3159_s24 = sld [smem:[#allocation10_spill]]  ;;  %v681_v52 = vlaneseq }
  0x1f   : > { %2351 = vmatprep.subr.bf16.mxu0 %v2655_v20  ;;  %2371 = vmatprep.subr.bf16.mxu1 %v2655_v20  ;;  %v2250_v30 = vld [vmem:[%s3158_s16] ss:$0 sm:$0xff]  ;;  %s3161_s25 = scalar_lea.vmem %s3133_s5, %s2767_s18  ;;  %s2657_s20 = smov 96   ;;  %vm806_vm3 = vcmask 64512   ;;  %vm935_vm5 = vcmask 1043456   ;;  %vm1261_vm6 = vcmask 130112  }
  0x20   : > { %2352 = vmatpush3.bf16.msra.mxu0 %v2539_v19  ;;  %2355 = vmatprep.mubr.msk.bf16.mxu0 %vm2656_vm2, %v2655_v20  ;;  %v2252_v39 = vld [vmem:[%s3161_s25] ss:$0 sm:$0xff]  ;;  %v682_v53 = vshrl.u32 %v681_v52, 7  ;;  %v684_v54 = vand.u32 127, %v681_v52  ;;  %s2658_s30 = smov 64   ;;  %s2659_s17 = smov 88  }
  0x21   : > { %2353 = vmatprep.subr.bf16.mxu0 %v2655_v20  ;;  %2373 = vmatprep.mubr.msk.bf16.mxu1 %vm2656_vm2, %v2655_v20  ;;  %s2660_s14 = smov 120   ;;  %s2661_s29 = smov 56   ;;  %vm1496_vm7 = vcmask 195712   ;;  %vm1731_vm8 = vcmask 261312  }
  0x22   : > { %v2832_v5 = vld [vmem:[#allocation3] sm:$0xff]  ;;  %v2834_v6 = vld [vmem:[#allocation3 + $0x8] sm:$0xff]  ;;  %vm685_vm4 = vcmp.gt.s32.totalorder %v684_v54, %v682_v53  ;;  %s2662_s16 = smov 80   ;;  %s2663_s15 = smov 112  }
  0x23   : > { %v690_v7 = vsel %vm689_vm1, %v2832_v5, 0.0  ;;  %v693_v8 = vsel %vm689_vm1, %v2834_v6, 0.0  ;;  %v2891_v56 = vsel %vm685_vm4, -1e+09, %v2655_v20  ;;  %s2664_s21 = smov 48   ;;  %s2667_s27 = smov 40  }
  0x24   : > { %691 = vadd.xlane.f32.xlu0 %v690_v7  ;;  %2354 = vmatpush3.bf16.msra.mxu0 %v2540_v21  ;;  %s3160_s23 = scalar_lea.vmem %s3159_s24, %s2767_s18  ;;  %s2665_s24 = smov 72  }
  0x25   : > { %2359 = vmatprep.subr.bf16.mxu0 %v2655_v20  ;;  %v2251_v34 = vld [vmem:[%s3160_s23] ss:$0 sm:$0xff]  ;;  %s2666_s23 = smov 104   ;;  %s2668_s19 = smov 8  }
  0x26   : > { %s2669_s25 = smov 16  }
  0x28   : > { %694 = vadd.xlane.f32.xlu0 %v693_v8 }
  0xb1   : > { %v692_v9 = vpop.xlane.xlu0 %691 }
  0xb2   : > { %v697_v10 = vmul.f32 0.03125, %v692_v9 }
  0xb4   : > { %v699_v11 = vsub.f32 %v2832_v5, %v697_v10 }
  0xb5   : > { %v695_v12 = vpop.xlane.xlu0 %694 }
  0xb6   : > { %v698_v13 = vmul.f32 0.03125, %v695_v12  ;;  %v701_v14 = vmul.f32 %v699_v11, %v699_v11 }
  0xb8   : > { %v700_v15 = vsub.f32 %v2834_v6, %v698_v13  ;;  %v703_v16 = vsel %vm689_vm1, %v701_v14, 0.0 }
  0xb9   : > { %704 = vadd.xlane.f32.xlu1 %v703_v16 }
  0xba   : > { %v702_v17 = vmul.f32 %v700_v15, %v700_v15 }
  0xbc   : > { %v706_v18 = vsel %vm689_vm1, %v702_v17, 0.0 }
  0xbd   : > { %707 = vadd.xlane.f32.xlu1 %v706_v18 }
 0x146   : > { %v705_v22 = vpop.xlane.xlu1 %704 }
 0x147   : > { %v709_v23 = vmul.f32 0.03125, %v705_v22 }
 0x149   : > { %v711_v24 = vadd.f32 1e-05, %v709_v23 }
 0x14a   : > { %v708_v25 = vpop.xlane.xlu1 %707 }
 0x14b   : > { %2553 = vrsqrt.f32 %v711_v24  ;;  %v710_v26 = vmul.f32 0.03125, %v708_v25 }
 0x14d   : > { %v712_v27 = vadd.f32 1e-05, %v710_v26 }
 0x14f   : > { %2555 = vrsqrt.f32 %v712_v27 }
 0x155   : > { %v2554_v28 = vpop.eup %2553 }
 0x156   : > { %v715_v29 = vmul.f32 %v2554_v28, %v699_v11 }
 0x158   : > { %v723_v33 = vmul.f32 %v2250_v30, %v715_v29 }
 0x159   : > { %v2556_v31 = vpop.eup %2555 }
 0x15a   : > { %v716_v32 = vmul.f32 %v2556_v31, %v700_v15  ;;  %v731_v36 = vadd.f32 %v2251_v34, %v723_v33 }
 0x15c   : > { %v724_v35 = vmul.f32 %v2250_v30, %v716_v32 }
 0x15e   : > { %v732_v37 = vadd.f32 %v2251_v34, %v724_v35 }
 0x160   : > { %v733_v38 = vpack.c.bf16 %v732_v37, %v731_v36 }
 0x162   : > { %2356 = vmatmul.mubr.msk.bf16.vlgmr.msra.gmra.mrb[0].mxu0 %vm689_vm1, %v733_v38 }
 0x163   : > { %2361 = vmatprep.mubr.msk.bf16.mxu0 %vm2656_vm2, %v2655_v20 }
 0x235   : > { %v794_v40 = vpop.f32.mrb[0].mxu0 }
 0x236   : > { %v795_v41 = vadd.f32 %v2252_v39, %v794_v40  ;;  %v2357_v42 = vpop.f32.mrb[1].mxu0 }
 0x237   : > { %v797_v43 = vpop.f32.mrb[2].mxu0 }
 0x238   : > { %v2872_v44 = vpack.c.bf16 %v795_v41, %v795_v41  ;;  %v798_v45 = vadd.f32 %v2252_v39, %v797_v43  ;;  %v2358_v46 = vpop.f32.mrb[3].mxu0 }
 0x23a   : > { %v2874_v47 = vpack.c.bf16 %v798_v45, %v798_v45  ;;  %804 = vrot.lane.b32.xlu0 %v2872_v44, %s2657_s20 }
 0x23c   : > { %854 = vrot.lane.b32.xlu1 %v2874_v47, %s2657_s20  ;;  %s3162_s20 = sld [smem:[#allocation9_spill]] }
 0x2ac   : > { %v805_v48 = vpop.permute.xlu0 %804 }
 0x2ad   : > { %v811_v49 = vsel %vm806_vm3, %v805_v48, 0 }
 0x2ae   : > { %2360 = vmatpush3.bf16.xpose.msra.mxu0 %v811_v49  ;;  %v855_v50 = vpop.permute.xlu1 %854 }
 0x2af   : > { %2365 = vmatprep.subr.bf16.mxu0 %v2655_v20  ;;  %v860_v51 = vsel %vm806_vm3, %v855_v50, 0 }
 0x2b5   : > { %2362 = vmatmul.mubr.msk.bf16.vlgmr.msra.gmra.mrb[4].mxu0 %vm806_vm3, %v2872_v44 }
 0x2b6   : > { %2366 = vmatpush3.bf16.xpose.msra.mxu0 %v860_v51  ;;  %2367 = vmatprep.mubr.msk.bf16.mxu0 %vm2656_vm2, %v2655_v20 }
 0x2b7   : > { %2377 = vmatprep.subr.bf16.mxu0 %v2655_v20 }
 0x2bd   : > { %2368 = vmatmul.mubr.msk.bf16.vlgmr.msra.gmra.mrb[8].mxu0 %vm806_vm3, %v2874_v47 }
 0x2be   : > { %2379 = vmatprep.mubr.msk.bf16.mxu0 %vm2656_vm2, %v2655_v20 }
 0x388   : > { %v847_v55 = vpop.f32.mrb[4].mxu0 }
 0x389   : > { %v902_v57 = vmul.f32 0.35355338, %v847_v55  ;;  %v2363_v58 = vpop.f32.mrb[5].mxu0 }
 0x38a   : > { %v850_v59 = vpop.f32.mrb[6].mxu0 }
 0x38b   : > { %v2364_v60 = vpop.f32.mrb[7].mxu0  ;;  %v904_v61 = vadd.f32 %v902_v57, %v2891_v56 }
 0x38d   : > { %v906_v62 = vsel %vm806_vm3, %v904_v61, -inf }
 0x38e   : > { %907 = vmax.xlane.f32.xlu1 %v906_v62 }
 0x390   : > { %v896_v63 = vpop.f32.mrb[8].mxu0 }
 0x391   : > { %v903_v0 = vmul.f32 0.35355338, %v896_v63  ;;  %v2369_v1 = vpop.f32.mrb[9].mxu0 }
 0x392   : > { %v899_v2 = vpop.f32.mrb[10].mxu0 }
 0x393   : > { %v2370_v3 = vpop.f32.mrb[11].mxu0  ;;  %v905_v4 = vadd.f32 %v903_v0, %v2891_v56 }
 0x395   : > { %v909_v7 = vsel %vm806_vm3, %v905_v4, -inf }
 0x396   : > { %910 = vmax.xlane.f32.xlu0 %v909_v7 }
 0x39f   : > { %979 = vrot.lane.b32.xlu1 %v2874_v47, %s2658_s30 }
 0x3a3   : > { %1031 = vrot.lane.b32.xlu1 %v2872_v44, %s2659_s17 }
 0x41b   : > { %v908_v8 = vpop.xlane.xlu1 %907 }
 0x41c   : > { %v912_v9 = vsub.f32 %v904_v61, %v908_v8 }
 0x41e   : > { %v914_v10 = vmul.f32 1.442695, %v912_v9 }
 0x41f   : > { %v980_v11 = vpop.permute.xlu1 %979 }
 0x420   : > { %2557 = vpow2.f32 %v914_v10  ;;  %v985_v12 = vsel %vm935_vm5, %v980_v11, 0 }
 0x421   : > { %2378 = vmatpush3.bf16.msra.mxu0 %v985_v12 }
 0x422   : > { %2389 = vmatprep.subr.bf16.mxu0 %v2655_v20 }
 0x423   : > { %v911_v13 = vpop.xlane.xlu0 %910  ;;  %v1032_v22 = vpop.permute.xlu1 %1031 }
 0x424   : > { %v913_v14 = vsub.f32 %v905_v4, %v911_v13  ;;  %v1037_v29 = vsel %vm806_vm3, %v1032_v22, 0 }
 0x426   : > { %v916_v15 = vmul.f32 1.442695, %v913_v14 }
 0x428   : > { %2559 = vpow2.f32 %v916_v15 }
 0x42a   : > { %v2558_v16 = vpop.eup %2557 }
 0x42b   : > { %v918_v17 = vsel %vm806_vm3, %v2558_v16, 0.0 }
 0x42c   : > { %919 = vadd.xlane.f32.xlu0 %v918_v17 }
 0x432   : > { %v2560_v18 = vpop.eup %2559 }
 0x433   : > { %v921_v19 = vsel %vm806_vm3, %v2560_v18, 0.0 }
 0x434   : > { %922 = vadd.xlane.f32.xlu1 %v921_v19 }
 0x442   : > { %930 = vrot.lane.b32.xlu0 %v2872_v44, %s2658_s30  ;;  %s2670_s30 = smov 24  }
 0x445   : > { %1081 = vrot.lane.b32.xlu1 %v2874_v47, %s2659_s17 }
 0x446   : > { %1029 = vrot.lane.b32.xlu0 %v2872_v44, %s2660_s14 }
 0x449   : > { %1079 = vrot.lane.b32.xlu1 %v2874_v47, %s2660_s14 }
 0x4b9   : > { %v920_v21 = vpop.xlane.xlu0 %919 }
 0x4ba   : > { %2561 = vrcp.f32 %v920_v21 }
 0x4bd   : > { %v931_v23 = vpop.permute.xlu0 %930 }
 0x4be   : > { %v937_v24 = vsel %vm935_vm5, %v931_v23, 0 }
 0x4bf   : > { %2372 = vmatpush3.bf16.msra.mxu1 %v937_v24 }
 0x4c0   : > { %2383 = vmatprep.subr.bf16.mxu1 %v2655_v20 }
 0x4c1   : > { %v923_v25 = vpop.xlane.xlu1 %922  ;;  %v1030_v34 = vpop.permute.xlu0 %1029 }
 0x4c2   : > { %2563 = vrcp.f32 %v923_v25 }
 0x4c4   : > { %v2562_v26 = vpop.eup %2561 }
 0x4c5   : > { %v925_v27 = vmul.f32 %v2562_v26, %v2558_v16  ;;  %v1082_v32 = vpop.permute.xlu1 %1081 }
 0x4c6   : > { %v1087_v35 = vsel %vm806_vm3, %v1082_v32, 0 }
 0x4c7   : > { %v928_v28 = vpack.c.bf16 %v925_v27, %v925_v27 }
 0x4c9   : > { %2374 = vmatmul.mubr.msk.bf16.vlgmr.msra.gmra.mrb[0].mxu1 %vm806_vm3, %v928_v28  ;;  %v1080_v36 = vpop.permute.xlu1 %1079 }
 0x4ca   : > { %2384 = vmatpush3.bf16.xpose.msra.mxu1 %v1037_v29  ;;  %2385 = vmatprep.mubr.msk.bf16.mxu1 %vm2656_vm2, %v2655_v20 }
 0x4cb   : > { %2395 = vmatprep.subr.bf16.mxu1 %v2655_v20 }
 0x4cc   : > { %v2564_v30 = vpop.eup %2563 }
 0x4cd   : > { %v927_v31 = vmul.f32 %v2564_v30, %v2560_v18 }
 0x4cf   : > { %v929_v33 = vpack.c.bf16 %v927_v31, %v927_v31 }
 0x4d1   : > { %2380 = vmatmul.mubr.msk.bf16.vlgmr.msra.gmra.mrb[12].mxu0 %vm806_vm3, %v929_v33  ;;  %2386 = vmatmul.mubr.msk.bf16.vlgmr.msra.gmra.mrb[4].mxu1 %vm806_vm3, %v1030_v34 }
 0x4d2   : > { %2390 = vmatpush3.bf16.xpose.msra.mxu0 %v1087_v35  ;;  %2391 = vmatprep.mubr.msk.bf16.mxu0 %vm2656_vm2, %v2655_v20 }
 0x4d3   : > { %2401 = vmatprep.subr.bf16.mxu0 %v2655_v20  ;;  %2397 = vmatprep.mubr.msk.bf16.mxu1 %vm2656_vm2, %v2655_v20 }
 0x4d9   : > { %2392 = vmatmul.mubr.msk.bf16.vlgmr.msra.gmra.mrb[16].mxu0 %vm806_vm3, %v1080_v36 }
 0x4da   : > { %2403 = vmatprep.mubr.msk.bf16.mxu0 %vm2656_vm2, %v2655_v20 }
 0x59c   : > { %v973_v37 = vpop.f32.mrb[0].mxu1 }
 0x59d   : > { %1027 = vst.msk [vmem:[#allocation2] sm:$0xff] %vm806_vm3, %v973_v37  ;;  %v2375_v38 = vpop.f32.mrb[1].mxu1 }
 0x59e   : > { %v976_v39 = vpop.f32.mrb[2].mxu1 }
 0x59f   : > { %v2376_v40 = vpop.f32.mrb[3].mxu1 }
 0x5a4   : > { %v1021_v41 = vpop.f32.mrb[12].mxu0  ;;  %v1073_v42 = vpop.f32.mrb[4].mxu1 }
 0x5a5   : > { %1028 = vst.msk [vmem:[#allocation2 + $0x8] sm:$0xff] %vm806_vm3, %v1021_v41  ;;  %v1129_v43 = vmul.f32 0.35355338, %v1073_v42  ;;  %v2381_v45 = vpop.f32.mrb[13].mxu0  ;;  %v2387_v46 = vpop.f32.mrb[5].mxu1 }
 0x5a6   : > { %v1024_v48 = vpop.f32.mrb[14].mxu0  ;;  %v1076_v49 = vpop.f32.mrb[6].mxu1 }
 0x5a7   : > { %v2382_v50 = vpop.f32.mrb[15].mxu0  ;;  %v2388_v51 = vpop.f32.mrb[7].mxu1  ;;  %v1131_v52 = vadd.f32 %v1129_v43, %v2891_v56 }
 0x5a9   : > { %v1133_v53 = vsel %vm806_vm3, %v1131_v52, -inf }
 0x5aa   : > { %1134 = vmax.xlane.f32.xlu0 %v1133_v53 }
 0x5ac   : > { %v1123_v54 = vpop.f32.mrb[16].mxu0 }
 0x5ad   : > { %v1130_v55 = vmul.f32 0.35355338, %v1123_v54  ;;  %v2393_v57 = vpop.f32.mrb[17].mxu0 }
 0x5ae   : > { %v1126_v58 = vpop.f32.mrb[18].mxu0 }
 0x5af   : > { %v2394_v59 = vpop.f32.mrb[19].mxu0  ;;  %v1132_v60 = vadd.f32 %v1130_v55, %v2891_v56 }
 0x5b1   : > { %v1136_v61 = vsel %vm806_vm3, %v1132_v60, -inf }
 0x5b2   : > { %1137 = vmax.xlane.f32.xlu1 %v1136_v61 }
 0x5c3   : > { %1205 = vrot.lane.b32.xlu1 %v2874_v47, %s2661_s29 }
 0x5c7   : > { %1266 = vrot.lane.b32.xlu1 %v2872_v44, %s2662_s16 }
 0x5cb   : > { %1316 = vrot.lane.b32.xlu1 %v2874_v47, %s2662_s16 }
 0x5cf   : > { %1314 = vrot.lane.b32.xlu1 %v2874_v47, %s2663_s15 }
 0x637   : > { %v1135_v62 = vpop.xlane.xlu0 %1134 }
 0x638   : > { %v1139_v63 = vsub.f32 %v1131_v52, %v1135_v62 }
 0x63a   : > { %v1141_v0 = vmul.f32 1.442695, %v1139_v63 }
 0x63c   : > { %2565 = vpow2.f32 %v1141_v0 }
 0x63f   : > { %v1138_v1 = vpop.xlane.xlu1 %1137 }
 0x640   : > { %v1140_v2 = vsub.f32 %v1132_v60, %v1138_v1 }
 0x642   : > { %v1143_v3 = vmul.f32 1.442695, %v1140_v2 }
 0x643   : > { %v1206_v4 = vpop.permute.xlu1 %1205 }
 0x644   : > { %2567 = vpow2.f32 %v1143_v3  ;;  %v1211_v7 = vsel %vm935_vm5, %v1206_v4, 0 }
 0x645   : > { %2402 = vmatpush3.bf16.msra.mxu0 %v1211_v7 }
 0x646   : > { %v2566_v8 = vpop.eup %2565  ;;  %2413 = vmatprep.subr.bf16.mxu0 %v2655_v20 }
 0x647   : > { %v1145_v9 = vsel %vm806_vm3, %v2566_v8, 0.0  ;;  %v1267_v19 = vpop.permute.xlu1 %1266 }
 0x648   : > { %1146 = vadd.xlane.f32.xlu0 %v1145_v9  ;;  %v1272_v24 = vsel %vm806_vm3, %v1267_v19, 0 }
 0x64b   : > { %v1317_v23 = vpop.permute.xlu1 %1316 }
 0x64c   : > { %v1322_v26 = vsel %vm806_vm3, %v1317_v23, 0 }
 0x64e   : > { %v2568_v10 = vpop.eup %2567 }
 0x64f   : > { %v1148_v11 = vsel %vm806_vm3, %v2568_v10, 0.0  ;;  %v1315_v28 = vpop.permute.xlu1 %1314 }
 0x650   : > { %1149 = vadd.xlane.f32.xlu0 %v1148_v11 }
 0x666   : > { %1157 = vrot.lane.b32.xlu0 %v2872_v44, %s2661_s29  ;;  %s3163_s29 = scalar_lea.vmem %s3135_s7, %s2767_s18 }
 0x66a   : > { %1264 = vrot.lane.b32.xlu0 %v2872_v44, %s2663_s15 }
 0x6d5   : > { %v1147_v12 = vpop.xlane.xlu0 %1146 }
 0x6d6   : > { %2569 = vrcp.f32 %v1147_v12 }
 0x6dd   : > { %v1150_v13 = vpop.xlane.xlu0 %1149 }
 0x6de   : > { %2571 = vrcp.f32 %v1150_v13 }
 0x6e0   : > { %v2570_v14 = vpop.eup %2569 }
 0x6e1   : > { %v1152_v15 = vmul.f32 %v2570_v14, %v2566_v8  ;;  %v1158_v16 = vpop.permute.xlu0 %1157 }
 0x6e2   : > { %v1163_v17 = vsel %vm935_vm5, %v1158_v16, 0 }
 0x6e3   : > { %2396 = vmatpush3.bf16.msra.mxu1 %v1163_v17  ;;  %v1155_v18 = vpack.c.bf16 %v1152_v15, %v1152_v15 }
 0x6e4   : > { %2407 = vmatprep.subr.bf16.mxu1 %v2655_v20 }
 0x6e5   : > { %v1265_v27 = vpop.permute.xlu0 %1264 }
 0x6e6   : > { %2398 = vmatmul.mubr.msk.bf16.vlgmr.msra.gmra.mrb[8].mxu1 %vm806_vm3, %v1155_v18 }
 0x6e7   : > { %2409 = vmatprep.mubr.msk.bf16.mxu1 %vm2656_vm2, %v2655_v20 }
 0x6e8   : > { %v2572_v21 = vpop.eup %2571 }
 0x6e9   : > { %v1154_v22 = vmul.f32 %v2572_v21, %v2568_v10 }
 0x6eb   : > { %v1156_v25 = vpack.c.bf16 %v1154_v22, %v1154_v22 }
 0x6ec   : > { %2408 = vmatpush3.bf16.xpose.msra.mxu1 %v1272_v24 }
 0x6ed   : > { %2404 = vmatmul.mubr.msk.bf16.vlgmr.msra.gmra.mrb[20].mxu0 %vm806_vm3, %v1156_v25  ;;  %2419 = vmatprep.subr.bf16.mxu1 %v2655_v20 }
 0x6ee   : > { %2414 = vmatpush3.bf16.xpose.msra.mxu0 %v1322_v26  ;;  %2415 = vmatprep.mubr.msk.bf16.mxu0 %vm2656_vm2, %v2655_v20 }
 0x6ef   : > { %2425 = vmatprep.subr.bf16.mxu0 %v2655_v20 }
 0x6f3   : > { %2410 = vmatmul.mubr.msk.bf16.vlgmr.msra.gmra.mrb[12].mxu1 %vm806_vm3, %v1265_v27 }
 0x6f4   : > { %2421 = vmatprep.mubr.msk.bf16.mxu1 %vm2656_vm2, %v2655_v20 }
 0x6f5   : > { %2416 = vmatmul.mubr.msk.bf16.vlgmr.msra.gmra.mrb[24].mxu0 %vm806_vm3, %v1315_v28 }
 0x6f6   : > { %2427 = vmatprep.mubr.msk.bf16.mxu0 %vm2656_vm2, %v2655_v20 }
 0x7b9   : > { %v2959_v29 = vpop.f32.mrb[8].mxu1 }
 0x7ba   : > { %v2399_v30 = vpop.f32.mrb[9].mxu1 }
 0x7bb   : > { %v1202_v31 = vpop.f32.mrb[10].mxu1 }
 0x7bc   : > { %v2400_v32 = vpop.f32.mrb[11].mxu1 }
 0x7c0   : > { %v2961_v33 = vpop.f32.mrb[20].mxu0 }
 0x7c1   : > { %v2405_v34 = vpop.f32.mrb[21].mxu0 }
 0x7c2   : > { %v1250_v35 = vpop.f32.mrb[22].mxu0 }
 0x7c3   : > { %v2406_v36 = vpop.f32.mrb[23].mxu0 }
 0x7c6   : > { %v1308_v37 = vpop.f32.mrb[12].mxu1 }
 0x7c7   : > { %v1364_v38 = vmul.f32 0.35355338, %v1308_v37  ;;  %v2411_v39 = vpop.f32.mrb[13].mxu1 }
 0x7c8   : > { %v1311_v40 = vpop.f32.mrb[14].mxu1  ;;  %v1358_v41 = vpop.f32.mrb[24].mxu0 }
 0x7c9   : > { %v1365_v42 = vmul.f32 0.35355338, %v1358_v41  ;;  %v2412_v43 = vpop.f32.mrb[15].mxu1  ;;  %v2417_v45 = vpop.f32.mrb[25].mxu0  ;;  %v1366_v46 = vadd.f32 %v1364_v38, %v2891_v56 }
 0x7ca   : > { %v1361_v48 = vpop.f32.mrb[26].mxu0 }
 0x7cb   : > { %v2418_v49 = vpop.f32.mrb[27].mxu0  ;;  %v1368_v50 = vsel %vm806_vm3, %v1366_v46, -inf  ;;  %v1367_v51 = vadd.f32 %v1365_v42, %v2891_v56 }
 0x7cc   : > { %1369 = vmax.xlane.f32.xlu0 %v1368_v50 }
 0x7cd   : > { %v1371_v52 = vsel %vm806_vm3, %v1367_v51, -inf }
 0x7ce   : > { %1372 = vmax.xlane.f32.xlu1 %v1371_v52 }
 0x7df   : > { %1440 = vrot.lane.b32.xlu1 %v2874_v47, %s2664_s21 }
 0x7e3   : > { %1501 = vrot.lane.b32.xlu1 %v2872_v44, %s2665_s24 }
 0x7e7   : > { %1551 = vrot.lane.b32.xlu1 %v2874_v47, %s2665_s24 }
 0x7eb   : > { %1549 = vrot.lane.b32.xlu1 %v2874_v47, %s2666_s23 }
 0x859   : > { %v1370_v53 = vpop.xlane.xlu0 %1369 }
 0x85a   : > { %v1374_v54 = vsub.f32 %v1366_v46, %v1370_v53 }
 0x85b   : > { %v1373_v55 = vpop.xlane.xlu1 %1372 }
 0x85c   : > { %v1376_v57 = vmul.f32 1.442695, %v1374_v54  ;;  %v1375_v58 = vsub.f32 %v1367_v51, %v1373_v55 }
 0x85e   : > { %2573 = vpow2.f32 %v1376_v57  ;;  %v1378_v59 = vmul.f32 1.442695, %v1375_v58 }
 0x85f   : > { %v1441_v60 = vpop.permute.xlu1 %1440 }
 0x860   : > { %2575 = vpow2.f32 %v1378_v59  ;;  %v1446_v61 = vsel %vm935_vm5, %v1441_v60, 0 }
 0x861   : > { %2426 = vmatpush3.bf16.msra.mxu0 %v1446_v61 }
 0x862   : > { %2437 = vmatprep.subr.bf16.mxu0 %v2655_v20 }
 0x863   : > { %v1502_v9 = vpop.permute.xlu1 %1501 }
 0x864   : > { %v1507_v15 = vsel %vm806_vm3, %v1502_v9, 0 }
 0x867   : > { %v1552_v14 = vpop.permute.xlu1 %1551 }
 0x868   : > { %v2574_v62 = vpop.eup %2573  ;;  %v1557_v17 = vsel %vm806_vm3, %v1552_v14, 0 }
 0x869   : > { %v1380_v63 = vsel %vm806_vm3, %v2574_v62, 0.0 }
 0x86a   : > { %v2576_v0 = vpop.eup %2575  ;;  %1381 = vadd.xlane.f32.xlu0 %v1380_v63 }
 0x86b   : > { %v1383_v1 = vsel %vm806_vm3, %v2576_v0, 0.0  ;;  %v1550_v19 = vpop.permute.xlu1 %1549 }
 0x86e   : > { %1384 = vadd.xlane.f32.xlu0 %v1383_v1 }
 0x884   : > { %1392 = vrot.lane.b32.xlu0 %v2872_v44, %s2664_s21 }
 0x888   : > { %1499 = vrot.lane.b32.xlu0 %v2872_v44, %s2666_s23  ;;  %s2671_s23 = smov [#allocation3]  }
 0x8f7   : > { %v1382_v2 = vpop.xlane.xlu0 %1381 }
 0x8f8   : > { %2577 = vrcp.f32 %v1382_v2 }
 0x8fb   : > { %v1385_v3 = vpop.xlane.xlu0 %1384 }
 0x8fc   : > { %2579 = vrcp.f32 %v1385_v3 }
 0x8ff   : > { %v1393_v4 = vpop.permute.xlu0 %1392 }
 0x900   : > { %v1398_v7 = vsel %vm935_vm5, %v1393_v4, 0 }
 0x901   : > { %2420 = vmatpush3.bf16.msra.mxu1 %v1398_v7  ;;  %v2541_v7 = vld [vmem:[%s3162_s20] sm:$0xff]  }
 0x902   : > { %v2578_v8 = vpop.eup %2577  ;;  %2431 = vmatprep.subr.bf16.mxu1 %v2655_v20 }
 0x903   : > { %v1387_v10 = vmul.f32 %v2578_v8, %v2574_v62  ;;  %v1500_v18 = vpop.permute.xlu0 %1499  ;;  %v2542_v8 = vld [vmem:[%s3162_s20 + $0x8] sm:$0xff]  }
 0x905   : > { %v1390_v11 = vpack.c.bf16 %v1387_v10, %v1387_v10 }
 0x906   : > { %v2580_v12 = vpop.eup %2579 }
 0x907   : > { %v1389_v13 = vmul.f32 %v2580_v12, %v2576_v0  ;;  %2422 = vmatmul.mubr.msk.bf16.vlgmr.msra.gmra.mrb[16].mxu1 %vm806_vm3, %v1390_v11 }
 0x908   : > { %2433 = vmatprep.mubr.msk.bf16.mxu1 %vm2656_vm2, %v2655_v20 }
 0x909   : > { %v1391_v16 = vpack.c.bf16 %v1389_v13, %v1389_v13 }
 0x90a   : > { %2432 = vmatpush3.bf16.xpose.msra.mxu1 %v1507_v15 }
 0x90b   : > { %2428 = vmatmul.mubr.msk.bf16.vlgmr.msra.gmra.mrb[28].mxu0 %vm806_vm3, %v1391_v16  ;;  %2443 = vmatprep.subr.bf16.mxu1 %v2655_v20 }
 0x90c   : > { %2438 = vmatpush3.bf16.xpose.msra.mxu0 %v1557_v17  ;;  %2439 = vmatprep.mubr.msk.bf16.mxu0 %vm2656_vm2, %v2655_v20 }
 0x90d   : > { %2449 = vmatprep.subr.bf16.mxu0 %v2655_v20 }
 0x911   : > { %2434 = vmatmul.mubr.msk.bf16.vlgmr.msra.gmra.mrb[20].mxu1 %vm806_vm3, %v1500_v18 }
 0x912   : > { %2445 = vmatprep.mubr.msk.bf16.mxu1 %vm2656_vm2, %v2655_v20 }
 0x913   : > { %2440 = vmatmul.mubr.msk.bf16.vlgmr.msra.gmra.mrb[32].mxu0 %vm806_vm3, %v1550_v19 }
 0x914   : > { %2451 = vmatprep.mubr.msk.bf16.mxu0 %vm2656_vm2, %v2655_v20 }
 0x9da   : > { %v1434_v21 = vpop.f32.mrb[16].mxu1 }
 0x9db   : > { %v2423_v22 = vpop.f32.mrb[17].mxu1 }
 0x9dc   : > { %v1437_v23 = vpop.f32.mrb[18].mxu1 }
 0x9dd   : > { %v2424_v24 = vpop.f32.mrb[19].mxu1  ;;  %v2272_v23 = vld [vmem:[%s3163_s29] ss:$0 sm:$0xff] }
 0x9de   : > { %v1482_v25 = vpop.f32.mrb[28].mxu0 }
 0x9df   : > { %v2429_v26 = vpop.f32.mrb[29].mxu0 }
 0x9e0   : > { %v1485_v27 = vpop.f32.mrb[30].mxu0 }
 0x9e1   : > { %v2430_v28 = vpop.f32.mrb[31].mxu0 }
 0x9e4   : > { %v1543_v30 = vpop.f32.mrb[20].mxu1 }
 0x9e5   : > { %v1599_v31 = vmul.f32 0.35355338, %v1543_v30  ;;  %v2435_v32 = vpop.f32.mrb[21].mxu1 }
 0x9e6   : > { %v1546_v34 = vpop.f32.mrb[22].mxu1  ;;  %v1593_v35 = vpop.f32.mrb[32].mxu0 }
 0x9e7   : > { %v1600_v36 = vmul.f32 0.35355338, %v1593_v35  ;;  %v2436_v37 = vpop.f32.mrb[23].mxu1  ;;  %v2441_v38 = vpop.f32.mrb[33].mxu0  ;;  %v1601_v39 = vadd.f32 %v1599_v31, %v2891_v56 }
 0x9e8   : > { %v1596_v40 = vpop.f32.mrb[34].mxu0 }
 0x9e9   : > { %v2442_v41 = vpop.f32.mrb[35].mxu0  ;;  %v1603_v42 = vsel %vm806_vm3, %v1601_v39, -inf  ;;  %v1602_v43 = vadd.f32 %v1600_v36, %v2891_v56 }
 0x9ea   : > { %1604 = vmax.xlane.f32.xlu0 %v1603_v42 }
 0x9eb   : > { %v1606_v45 = vsel %vm806_vm3, %v1602_v43, -inf }
 0x9ec   : > { %1607 = vmax.xlane.f32.xlu1 %v1606_v45  ;;  %v2543_v45 = vld [vmem:[%s2807_s4] sm:$0xff]  }
 0x9fd   : > { %1675 = vrot.lane.b32.xlu1 %v2874_v47, %s2667_s27 }
 0xa01   : > { %1255 = vrot.lane.b32.xlu1 %v2959_v29, %s2668_s19 }
 0xa05   : > { %1257 = vrot.lane.b32.xlu1 %v2961_v33, %s2668_s19 }
 0xa09   : > { %1492 = vrot.lane.b32.xlu1 %v1482_v25, %s2669_s25 }
 0xa77   : > { %v1605_v46 = vpop.xlane.xlu0 %1604 }
 0xa78   : > { %v1609_v48 = vsub.f32 %v1601_v39, %v1605_v46  ;;  %v2544_v46 = vld [vmem:[%s2807_s4 + $0x8] sm:$0xff]  }
 0xa79   : > { %v1608_v56 = vpop.xlane.xlu1 %1607 }
 0xa7a   : > { %v1611_v49 = vmul.f32 1.442695, %v1609_v48  ;;  %v1610_v50 = vsub.f32 %v1602_v43, %v1608_v56 }
 0xa7c   : > { %2581 = vpow2.f32 %v1611_v49  ;;  %v1613_v51 = vmul.f32 1.442695, %v1610_v50 }
 0xa7d   : > { %v1676_v52 = vpop.permute.xlu1 %1675 }
 0xa7e   : > { %2583 = vpow2.f32 %v1613_v51  ;;  %v1681_v47 = vsel %vm935_vm5, %v1676_v52, 0 }
 0xa7f   : > { %2450 = vmatpush3.bf16.msra.mxu0 %v1681_v47 }
 0xa80   : > { %2463 = vmatprep.subr.bf16.mxu0 %v2655_v20 }
 0xa81   : > { %v1256_v29 = vpop.permute.xlu1 %1255 }
 0xa82   : > { %1262 = vst.msk [vmem:[#allocation2] sm:$0xff] %vm1261_vm6, %v1256_v29 }
 0xa85   : > { %v1258_v33 = vpop.permute.xlu1 %1257 }
 0xa86   : > { %v2582_v53 = vpop.eup %2581  ;;  %1263 = vst.msk [vmem:[#allocation2 + $0x8] sm:$0xff] %vm1261_vm6, %v1258_v33  ;;  %v2276_v33 = vld [vmem:[%s645_s3] ss:$0 sm:$0xff] }
 0xa87   : > { %v1615_v54 = vsel %vm806_vm3, %v2582_v53, 0.0 }
 0xa88   : > { %v2584_v55 = vpop.eup %2583  ;;  %1616 = vadd.xlane.f32.xlu0 %v1615_v54 }
 0xa89   : > { %v1493_v57 = vpop.permute.xlu1 %1492  ;;  %v1618_v58 = vsel %vm806_vm3, %v2584_v55, 0.0 }
 0xa8a   : > { %1498 = vst.msk [vmem:[#allocation2 + $0x8] sm:$0xff] %vm1496_vm7, %v1493_v57  ;;  %v2277_v57 = vld [vmem:[%s648_s28] ss:$0 sm:$0xff] }
 0xa8c   : > { %1619 = vadd.xlane.f32.xlu0 %v1618_v58 }
 0xaa2   : > { %1627 = vrot.lane.b32.xlu0 %v2872_v44, %s2667_s27  ;;  %s2060_s27 = sshll.u32 %s2671_s23, 4  ;;  %s2061_s27 = int_to_ptr.vmem [resolvable:$true] %s2060_s27 }
 0xaa3   : > { %s2601_s18 = scalar_lea.vmem %s2061_s27, 256  ;;  %p2608_p10 = scmp.lt.s32.totalorder %s2061_s27, %s2061_s27 }
 0xaa4   : > { %p2602_p7 = scmp.ne.s32.totalorder %s2061_s27, %s2601_s18  ;;  %p2609_p11 = scmp.lt.s32.totalorder %s2601_s18, %s2601_s18 }
 0xaa6   : > { %1490 = vrot.lane.b32.xlu0 %v1434_v21, %s2669_s25  ;;  %p2610_p12 = por %p2609_p11, %p2608_p10 }
 0xb15   : > { %v1617_v59 = vpop.xlane.xlu0 %1616 }
 0xb16   : > { %2585 = vrcp.f32 %v1617_v59 }
 0xb19   : > { %v1620_v60 = vpop.xlane.xlu0 %1619 }
 0xb1a   : > { %2587 = vrcp.f32 %v1620_v60 }
 0xb1d   : > { %v1628_v61 = vpop.permute.xlu0 %1627 }
 0xb1e   : > { %v1633_v62 = vsel %vm935_vm5, %v1628_v61, 0 }
 0xb1f   : > { %2444 = vmatpush3.bf16.msra.mxu1 %v1633_v62  ;;  %v2545_v62 = vld [vmem:[%s2817_s22] sm:$0xff]  }
 0xb20   : > { %v2586_v63 = vpop.eup %2585  ;;  %2455 = vmatprep.subr.bf16.mxu1 %v2655_v20 }
 0xb21   : > { %v1622_v0 = vmul.f32 %v2586_v63, %v2582_v53  ;;  %v1491_v1 = vpop.permute.xlu0 %1490  ;;  %v2546_v63 = vld [vmem:[%s2817_s22 + $0x8] sm:$0xff]  }
 0xb22   : > { %1497 = vst.msk [vmem:[#allocation2] sm:$0xff] %vm1496_vm7, %v1491_v1  ;;  %v2548_v1 = vld [vmem:[%s2817_s22 + $0x18] sm:$0xff]  }
 0xb23   : > { %v1625_v2 = vpack.c.bf16 %v1622_v0, %v1622_v0  ;;  %v2547_v0 = vld [vmem:[%s2817_s22 + $0x10] sm:$0xff]  }
 0xb24   : > { %v2588_v44 = vpop.eup %2587 }
 0xb25   : > { %v1624_v3 = vmul.f32 %v2588_v44, %v2584_v55  ;;  %2446 = vmatmul.mubr.msk.bf16.vlgmr.msra.gmra.mrb[24].mxu1 %vm806_vm3, %v1625_v2  ;;  %v2549_v2 = vld [vmem:[%s2817_s22 + $0x20] sm:$0xff]   ;;  %v2550_v44 = vld [vmem:[%s2817_s22 + $0x28] sm:$0xff]  }
 0xb26   : > { %2459 = vmatprep.mubr.msk.bf16.mxu1 %vm2656_vm2, %v2655_v20  ;;  %2456 = vmatpush3.bf16.msra.mxu1 %v2541_v7  ;;  %v2278_v7 = vld [vmem:[%s656_s6] ss:$0 sm:$0xff]  ;;  %s3164_s6 = sld [smem:[#allocation7_spill]] }
 0xb27   : > { %v1626_v4 = vpack.c.bf16 %v1624_v3, %v1624_v3  ;;  %2457 = vmatprep.subr.bf16.mxu1 %v2655_v20  ;;  %v2551_v3 = vld [vmem:[%s2817_s22 + $0x30] sm:$0xff]  }
 0xb29   : > { %2452 = vmatmul.mubr.msk.bf16.vlgmr.msra.gmra.mrb[36].mxu0 %vm806_vm3, %v1626_v4  ;;  %v2552_v4 = vld [vmem:[%s2817_s22 + $0x38] sm:$0xff]  }
 0xb2a   : > { %2467 = vmatprep.mubr.msk.bf16.mxu0 %vm2656_vm2, %v2655_v20  ;;  %2458 = vmatpush3.bf16.msra.mxu1 %v2542_v8 }
 0xb2b   : > { %2471 = vmatprep.subr.bf16.mxu1 %v2655_v20  ;;  %2464 = vmatpush3.bf16.msra.mxu0 %v2543_v45 }
 0xb2c   : > { %2465 = vmatprep.subr.bf16.mxu0 %v2655_v20  ;;  %s3165_s25 = sadd.s32 4294967295, %s3164_s6  }
 0xb2d   : > { %p3089_p6 = scmp.eq.s32.totalorder %s3165_s25, 1 }
 0xb2f   : > { %2466 = vmatpush3.bf16.msra.mxu0 %v2544_v46  ;;  %p2603_p8 = pnand %p2602_p7, %p3089_p6 }
 0xb31   : > { %p2604_p9 = pneg %p2603_p8 }
 0xb33   : > { %p2611_p13 = pnand %p2610_p12, %p2604_p9 }
 0xbf8   : > { %v1669_v9 = vpop.f32.mrb[24].mxu1 }
 0xbf9   : > { %1725 = vrot.lane.b32.xlu0 %v1669_v9, %s2670_s30  ;;  %v2447_v10 = vpop.f32.mrb[25].mxu1 }
 0xbfa   : > { %v1672_v11 = vpop.f32.mrb[26].mxu1 }
 0xbfb   : > { %v2448_v12 = vpop.f32.mrb[27].mxu1 }
 0xbfc   : > { %v1717_v13 = vpop.f32.mrb[36].mxu0 }
 0xbfd   : > { %1727 = vrot.lane.b32.xlu1 %v1717_v13, %s2670_s30  ;;  %v2453_v14 = vpop.f32.mrb[37].mxu0 }
 0xbfe   : > { %v1720_v15 = vpop.f32.mrb[38].mxu0 }
 0xbff   : > { %v2454_v16 = vpop.f32.mrb[39].mxu0 }
 0xc6b   : > { %v1726_v17 = vpop.permute.xlu0 %1725 }
 0xc6c   : > { %1732 = vst.msk [vmem:[#allocation2] sm:$0xff] %vm1731_vm8, %v1726_v17 }
 0xc6f   : > { %v1728_v18 = vpop.permute.xlu1 %1727 }
 0xc70   : > { %1733 = vst.msk [vmem:[#allocation2 + $0x8] sm:$0xff] %vm1731_vm8, %v1728_v18 }
 0xc73   : > { %v1734_v19 = vld [vmem:[#allocation2] sm:$0xff] }
 0xc77   : > { %v1735_v21 = vld [vmem:[#allocation2 + $0x8] sm:$0xff] }
 0xc78   : > { %v1736_v22 = vpack.c.bf16 %v1735_v21, %v1734_v19 }
 0xc7a   : > { %2460 = vmatmul.mubr.msk.bf16.vlgmr.msra.gmra.mrb[28].mxu1 %vm689_vm1, %v1736_v22 }
 0xc7b   : > { %2487 = vmatprep.mubr.msk.bf16.mxu1 %vm2656_vm2, %v2655_v20  ;;  %2472 = vmatpush3.bf16.msra.mxu1 %v2545_v62 }
 0xc7c   : > { %2473 = vmatprep.subr.bf16.mxu1 %v2655_v20 }
 0xc7f   : > { %2474 = vmatpush3.bf16.msra.mxu1 %v2546_v63 }
 0xc80   : > { %2475 = vmatprep.subr.bf16.mxu1 %v2655_v20 }
 0xc83   : > { %2476 = vmatpush3.bf16.msra.mxu1 %v2547_v0 }
 0xc84   : > { %2477 = vmatprep.subr.bf16.mxu1 %v2655_v20 }
 0xc87   : > { %2478 = vmatpush3.bf16.msra.mxu1 %v2548_v1 }
 0xc88   : > { %2479 = vmatprep.subr.bf16.mxu1 %v2655_v20 }
 0xc8b   : > { %2480 = vmatpush3.bf16.msra.mxu1 %v2549_v2 }
 0xc8c   : > { %2481 = vmatprep.subr.bf16.mxu1 %v2655_v20 }
 0xc8f   : > { %2482 = vmatpush3.bf16.msra.mxu1 %v2550_v44 }
 0xc90   : > { %2483 = vmatprep.subr.bf16.mxu1 %v2655_v20 }
 0xc93   : > { %2484 = vmatpush3.bf16.msra.mxu1 %v2551_v3 }
 0xc94   : > { %2485 = vmatprep.subr.bf16.mxu1 %v2655_v20 }
 0xc97   : > { %2486 = vmatpush3.bf16.msra.mxu1 %v2552_v4 }
 0xd4d   : > { %v1797_v24 = vpop.f32.mrb[28].mxu1 }
 0xd4e   : > { %v1798_v25 = vadd.f32 %v2272_v23, %v1797_v24  ;;  %v2461_v26 = vpop.f32.mrb[29].mxu1 }
 0xd4f   : > { %v1800_v27 = vpop.f32.mrb[30].mxu1 }
 0xd50   : > { %v3034_v28 = vadd.f32 %v1798_v25, %v2832_v5  ;;  %v1801_v30 = vadd.f32 %v2272_v23, %v1800_v27  ;;  %v2462_v31 = vpop.f32.mrb[31].mxu1  ;;  %v2284_v27 = vld [vmem:[%s664_s26] ss:$0 sm:$0xff] }
 0xd52   : > { %v3037_v32 = vadd.f32 %v1801_v30, %v2834_v6  ;;  %v1808_v34 = vsel %vm689_vm1, %v3034_v28, 0.0 }
 0xd53   : > { %1809 = vadd.xlane.f32.xlu0 %v1808_v34 }
 0xd54   : > { %v1811_v35 = vsel %vm689_vm1, %v3037_v32, 0.0 }
 0xd55   : > { %1812 = vadd.xlane.f32.xlu1 %v1811_v35 }
 0xde0   : > { %v1810_v36 = vpop.xlane.xlu0 %1809 }
 0xde1   : > { %v1814_v37 = vmul.f32 0.03125, %v1810_v36 }
 0xde2   : > { %v1813_v38 = vpop.xlane.xlu1 %1812 }
 0xde3   : > { %v1816_v5 = vsub.f32 %v3034_v28, %v1814_v37  ;;  %v1815_v39 = vmul.f32 0.03125, %v1813_v38 }
 0xde5   : > { %v1817_v40 = vsub.f32 %v3037_v32, %v1815_v39  ;;  %v1818_v6 = vmul.f32 %v1816_v5, %v1816_v5 }
 0xde7   : > { %v1820_v41 = vsel %vm689_vm1, %v1818_v6, 0.0  ;;  %v1819_v42 = vmul.f32 %v1817_v40, %v1817_v40 }
 0xde8   : > { %1821 = vadd.xlane.f32.xlu0 %v1820_v41 }
 0xde9   : > { %v1823_v43 = vsel %vm689_vm1, %v1819_v42, 0.0 }
 0xdec   : > { %1824 = vadd.xlane.f32.xlu0 %v1823_v43 }
 0xe75   : > { %v1822_v48 = vpop.xlane.xlu0 %1821 }
 0xe76   : > { %v1826_v56 = vmul.f32 0.03125, %v1822_v48 }
 0xe78   : > { %v1828_v49 = vadd.f32 1e-05, %v1826_v56 }
 0xe79   : > { %v1825_v50 = vpop.xlane.xlu0 %1824 }
 0xe7a   : > { %2589 = vrsqrt.f32 %v1828_v49  ;;  %v1827_v51 = vmul.f32 0.03125, %v1825_v50 }
 0xe7c   : > { %v1829_v52 = vadd.f32 1e-05, %v1827_v51 }
 0xe7e   : > { %2591 = vrsqrt.f32 %v1829_v52 }
 0xe84   : > { %v2590_v47 = vpop.eup %2589 }
 0xe85   : > { %v1832_v29 = vmul.f32 %v2590_v47, %v1816_v5 }
 0xe87   : > { %v1840_v54 = vmul.f32 %v2276_v33, %v1832_v29 }
 0xe88   : > { %v2592_v53 = vpop.eup %2591 }
 0xe89   : > { %v1833_v55 = vmul.f32 %v2592_v53, %v1817_v40  ;;  %v1848_v59 = vadd.f32 %v2277_v57, %v1840_v54 }
 0xe8b   : > { %v1841_v58 = vmul.f32 %v2276_v33, %v1833_v55 }
 0xe8d   : > { %v1849_v60 = vadd.f32 %v2277_v57, %v1841_v58 }
 0xe8f   : > { %v1850_v61 = vpack.c.bf16 %v1849_v60, %v1848_v59 }
 0xe91   : > { %2468 = vmatmul.mubr.msk.bf16.vlgmr.msra.gmra.mrb[40].mxu0 %vm689_vm1, %v1850_v61 }
 0xf64   : > { %v1911_v8 = vpop.f32.mrb[40].mxu0 }
 0xf65   : > { %v1912_v9 = vadd.f32 %v2278_v7, %v1911_v8  ;;  %v2469_v10 = vpop.f32.mrb[41].mxu0 }
 0xf66   : > { %v1914_v11 = vpop.f32.mrb[42].mxu0 }
 0xf67   : > { %v2282_v12 = vmul.f32 -1.702, %v1912_v9  ;;  %v1915_v13 = vadd.f32 %v2278_v7, %v1914_v11  ;;  %v2470_v14 = vpop.f32.mrb[43].mxu0 }
 0xf69   : > { %v1922_v15 = vmul.f32 1.442695, %v2282_v12  ;;  %v2283_v16 = vmul.f32 -1.702, %v1915_v13 }
 0xf6b   : > { %2593 = vpow2.f32 %v1922_v15  ;;  %v1924_v17 = vmul.f32 1.442695, %v2283_v16 }
 0xf6d   : > { %2595 = vpow2.f32 %v1924_v17 }
 0xf75   : > { %v2594_v20 = vpop.eup %2593 }
 0xf76   : > { %v1926_v18 = vadd.f32 1.0, %v2594_v20 }
 0xf77   : > { %v2596_v19 = vpop.eup %2595 }
 0xf78   : > { %2597 = vrcp.f32 %v1926_v18  ;;  %v1927_v21 = vadd.f32 1.0, %v2596_v19 }
 0xf7a   : > { %2599 = vrcp.f32 %v1927_v21 }
 0xf82   : > { %v2598_v22 = vpop.eup %2597 }
 0xf83   : > { %v1932_v24 = vmul.f32 %v2598_v22, %v1912_v9 }
 0xf84   : > { %v2600_v23 = vpop.eup %2599 }
 0xf85   : > { %v1933_v25 = vmul.f32 %v2600_v23, %v1915_v13 }
 0xf87   : > { %v1934_v26 = vpack.c.bf16 %v1933_v25, %v1932_v24 }
 0xf89   : > { %2488 = vmatmul.mubr.bf16.vlgmr.msra.gmra.mrb[32].mxu1 %v1934_v26 }
0x105c   : > { %v2040_v30 = vpop.f32.mrb[32].mxu1 }
0x105d   : > { %v2041_v31 = vadd.f32 %v2284_v27, %v2040_v30  ;;  %v2489_v34 = vpop.f32.mrb[33].mxu1 }
0x105e   : > { %v2043_v35 = vpop.f32.mrb[34].mxu1 }
0x105f   : > { %v2047_v36 = vadd.f32 %v2041_v31, %v3034_v28  ;;  %v2044_v37 = vadd.f32 %v2284_v27, %v2043_v35  ;;  %v2490_v38 = vpop.f32.mrb[35].mxu1 }
0x1061   : > { %2049 = vst.msk [vmem:[#allocation3] sm:$0xff] %vm689_vm1, %v2047_v36  ;;  %v2048_v5 = vadd.f32 %v2044_v37, %v3037_v32 }
0x1063   : > { %2050 = vst.msk [vmem:[#allocation3 + $0x8] sm:$0xff] %vm689_vm1, %v2048_v5 }
0x1064   : > { %2614 = shalt.err (!%p2611_p13)
}
0x1065   : > { %s3167_s17 = sld [smem:[#allocation13_spill]] }
0x106b   : > { %s2615_s14 = scalar_lea.hbm %s3167_s17, 256 }
0x106c   : > { %p2616_p0 = scmp.ne.s32.totalorder %s3167_s17, %s2615_s14  ;;  %p2621_p3 = scmp.lt.u32.totalorder %s2615_s14, %s3167_s17 }
0x106e   : > { %p2617_p1 = pnand %p2616_p0, %p3089_p6 }
0x1070   : > { %p2618_p2 = pneg %p2617_p1 }
0x1072   : > { %p2623_p4 = pnand %p2621_p3, %p2618_p2 }
0x1074   : > { %2626 = shalt.err (!%p2623_p4)
}
0x1075   : > { %s2672_s21 = smov 128  }
0x1076   : > { %2492 = dma.vmem_to_hbm [thread:$0]  (%p3089_p6), %s2061_s27, 256, %s3167_s17, [#allocation4], %s2672_s21, %s2672_s21, %s2668_s19  }
0x1077   : > { %2640 = dma.done.wait (%p3089_p6), [#allocation4], 256  }
0x1078   : > { %2642 = vsyncadd (%p3089_p6), [#allocation4], 4294967040 }
0x1079 PF: > { %s3168_s6 = sld [smem:[#allocation7_spill]]  ;;  %s3169_s29 = sld [smem:[#allocation6_spill]] }
0x107a   : > { %s3170_s30 = sld [smem:[#allocation8_spill]] }
0x107f   : > { %s25_s15 = sadd.s32 1, %s3168_s6  }
0x1080   : > { %p22_p5 = scmp.ge.s32.totalorder %s25_s15, 4  }
0x1082   :  { %24 = sbr.rel (!%p22_p5) target bundleno = 7 (0x7), region = 144 }
0x1089   :  { %2076 = vsyncpa [#allocation4], 1 }
0x108a   :  { %2078 = vsyncpa [#allocation4 + $0x1], 1 }

</bundles_post_ra>
